<compile_context>
chip_gen: v7x
topology: tpu7x:2x2x1
jax: 0.10.0
libtpu: 0.0.40
codegen_flags: <defaults>
</compile_context>

<pallas_src>
import functools

import jax
import jax.numpy as jnp
from jax import lax
from jax.experimental import pallas as pl
from jax.experimental.pallas import tpu as pltpu


def _round_up(x, m):
    return ((x + m - 1) // m) * m


def _pad_to(a, target_shape):
    """Zero-pad `a` up to `target_shape` (no-op if already that shape)."""
    pads = [(0, t - s) for s, t in zip(a.shape, target_shape)]
    if any(p[1] for p in pads):
        a = jnp.pad(a, pads)
    return a


def _default_block_rows():
    # Generation-tuned row tile: v5e's 4x128^2 MXU saturates at 128 rows;
    # v6e measures best near 512-row tiles; keep 256 elsewhere (v7x: 64 MiB VMEM).
    try:
        kind = jax.devices()[0].device_kind.lower()
    except Exception:
        return 256
    if "v5 lite" in kind or "v5e" in kind or "v5lite" in kind:
        return 128
    if "v6" in kind:
        return 512
    return 256


def _layernorm(x, gamma, beta, true_dim, eps=1e-12):
    """BertLayerNorm over the last dim of x (shape (TM, Hp)).

    x may be lane-padded past `true_dim`; the padded lanes are exactly zero
    (they come from a zero-padded matmul + zero-padded bias), so the mean is
    sum/true_dim.  The variance is two-pass (mean of (x - mu)^2, numerically
    safe) with the padded lanes of (x - mu) masked out.  gamma/beta are zero
    on the padded lanes, so the result's padded lanes stay exactly zero.
    """
    inv_n = 1.0 / float(true_dim)
    mu = jnp.sum(x, axis=-1, keepdims=True) * inv_n
    xc = x - mu
    if x.shape[-1] != true_dim:
        lane = lax.broadcasted_iota(jnp.int32, x.shape, dimension=x.ndim - 1)
        xc_stat = jnp.where(lane < true_dim, xc, 0.0)
    else:
        xc_stat = xc
    var = jnp.sum(xc_stat * xc_stat, axis=-1, keepdims=True) * inv_n
    inv = lax.rsqrt(var + eps)                  # EUP; gamma folded into scale
    return xc * (inv * gamma) + beta


def wmim_kernel(
    x_ref,          # (TM, Hp)  f32 input_ rows (H zero-padded to 128k)
    w_ref,          # (TM, Pp)  matmul-dtype weight rows (P zero-padded to 128k)
    mw1_w_ref,      # (Pp, Hp)  map_weight Linear1 weight
    mw1_b_ref,      # (1, Hp)   f32
    mw_g_ref,       # (1, Hp)   map_weight LayerNorm gamma (0 on padded lanes)
    mw_be_ref,      # (1, Hp)   map_weight LayerNorm beta
    mw2_w_ref,      # (Hp, Hp)  map_weight Linear2 weight
    mw2_b_ref,      # (1, Hp)
    n1_w_ref,       # (Hp, Hp)  net Linear1 weight
    n1_b_ref,       # (1, Hp)
    n_g_ref,        # (1, Hp)   net LayerNorm gamma
    n_be_ref,       # (1, Hp)   net LayerNorm beta
    n2_w_ref,       # (Hp, Lp)  net Linear2 weight (L zero-padded to 128k)
    n2_b_ref,       # (1, Lp)
    out_ref,        # (TM, Lp)
    *, true_h,
):
    mm_dtype = mw1_w_ref.dtype

    # ---- map_weight branch: Linear -> ReLU -> LayerNorm -> Linear ----
    h = jnp.dot(w_ref[...].astype(mm_dtype), mw1_w_ref[...],
                preferred_element_type=jnp.float32) + mw1_b_ref[...]
    h = jnp.maximum(h, 0.0)
    h = _layernorm(h, mw_g_ref[...], mw_be_ref[...], true_h)
    h = jnp.dot(h.astype(mm_dtype), mw2_w_ref[...],
                preferred_element_type=jnp.float32) + mw2_b_ref[...]

    # ---- net branch on (input_ + mapped weight) ----
    y = x_ref[...].astype(jnp.float32) + h
    y = jnp.dot(y.astype(mm_dtype), n1_w_ref[...],
                preferred_element_type=jnp.float32) + n1_b_ref[...]
    y = jnp.maximum(y, 0.0)
    y = _layernorm(y, n_g_ref[...], n_be_ref[...], true_h)
    y = jnp.dot(y.astype(mm_dtype), n2_w_ref[...],
                preferred_element_type=jnp.float32) + n2_b_ref[...]

    out_ref[...] = y.astype(out_ref.dtype)


def weighted_masked_image_modeling(input_, weight, params, *,
                                   block_rows=None,
                                   matmul_dtype=jnp.bfloat16,
                                   out_dtype=jnp.float32):
    """input_: (N, H) f32;  weight: (N, P, 1) f32;  params: dict of arrays."""
    N, H = input_.shape
    P = weight.shape[1]
    L = params["n2_w"].shape[1]

    mm_itemsize = jnp.dtype(matmul_dtype).itemsize
    out_itemsize = jnp.dtype(out_dtype).itemsize

    # Lane-dense padding of the LAST dims only (token axis N is never padded).
    Hp = _round_up(H, 128)
    Pp = _round_up(P, 128)
    Lp = _round_up(L, 128)

    # Row tiling over the token axis.
    if block_rows is None:
        block_rows = _default_block_rows()
    row_align = max(8, 32 // mm_itemsize)          # bf16 -> 16, f32 -> 8
    # Allow at least two row tiles when possible so v7x megacore can split them.
    tm_cap = _round_up(max(pl.cdiv(N, 2), 1), row_align)
    TM = _round_up(min(block_rows, tm_cap), row_align)
    grid = (pl.cdiv(N, TM),)

    # Inputs: pad only the last (lane) dims; H/P padding is a no-op when they
    # are already multiples of 128.
    x = _pad_to(input_.astype(jnp.float32), (N, Hp))
    w2d = _pad_to(jnp.squeeze(weight, axis=-1), (N, Pp)).astype(matmul_dtype)

    # Parameters: zero-padded (gamma/beta padded with ZEROS so padded lanes of
    # every LayerNorm output are exactly zero); matmul operands in matmul_dtype.
    mw1_w = _pad_to(params["mw1_w"], (Pp, Hp)).astype(matmul_dtype)
    mw1_b = _pad_to(params["mw1_b"], (1, Hp))
    mw_g = _pad_to(params["mw_g"], (1, Hp))
    mw_be = _pad_to(params["mw_b"], (1, Hp))
    mw2_w = _pad_to(params["mw2_w"], (Hp, Hp)).astype(matmul_dtype)
    mw2_b = _pad_to(params["mw2_b"], (1, Hp))
    n1_w = _pad_to(params["n1_w"], (Hp, Hp)).astype(matmul_dtype)
    n1_b = _pad_to(params["n1_b"], (1, Hp))
    n_g = _pad_to(params["n_g"], (1, Hp))
    n_be = _pad_to(params["n_b"], (1, Hp))
    n2_w = _pad_to(params["n2_w"], (Hp, Lp)).astype(matmul_dtype)
    n2_b = _pad_to(params["n2_b"], (1, Lp))

    weight_args = (mw1_w, mw1_b, mw_g, mw_be, mw2_w, mw2_b,
                   n1_w, n1_b, n_g, n_be, n2_w, n2_b)

    # VMEM budget: resident weights (x weight-buffer count) + double-buffered
    # activation tiles + f32 intermediates; cap is generation-aware.
    weight_bytes = sum(int(a.size) * a.dtype.itemsize for a in weight_args)
    in_tile_bytes = TM * (Hp * 4 + Pp * mm_itemsize)
    out_tile_bytes = TM * Lp * out_itemsize
    interm_bytes = TM * (6 * Hp + 2 * Lp) * 4
    try:
        vmem_cap = int(pltpu.get_tpu_info().vmem_capacity_bytes)
    except Exception:
        vmem_cap = 64 << 20        # conservative default (v7x per-TC VMEM)

    def _vmem_limit(weight_buffers):
        need = (weight_buffers * weight_bytes
                + 2 * (in_tile_bytes + out_tile_bytes) + interm_bytes)
        return min(max(int(need * 1.25), 16 << 20), int(0.85 * vmem_cap))

    flops = 2 * N * (Pp * Hp + 2 * Hp * Hp + Hp * Lp)
    bytes_accessed = (int(x.size) * 4 + int(w2d.size) * mm_itemsize
                      + weight_bytes + N * Lp * out_itemsize)
    cost = pl.CostEstimate(flops=flops, transcendentals=2 * N,
                           bytes_accessed=bytes_accessed)

    kernel = functools.partial(wmim_kernel, true_h=H)

    def build(single_buffer_weights):
        if single_buffer_weights:
            # Constant index_map -> DMA'd once; Buffered(1) avoids holding a
            # useless second copy of every resident weight in VMEM.
            def const_spec(a):
                return pl.BlockSpec(a.shape, lambda i: (0, 0),
                                    pipeline_mode=pl.Buffered(1))
        else:
            def const_spec(a):
                return pl.BlockSpec(a.shape, lambda i: (0, 0))

        in_specs = (
            [pl.BlockSpec((TM, Hp), lambda i: (i, 0)),
             pl.BlockSpec((TM, Pp), lambda i: (i, 0))]
            + [const_spec(a) for a in weight_args]
        )
        out_specs = pl.BlockSpec((TM, Lp), lambda i: (i, 0))

        return pl.pallas_call(
            kernel,
            out_shape=jax.ShapeDtypeStruct((N, Lp), out_dtype),
            grid=grid,
            in_specs=in_specs,
            out_specs=out_specs,
            compiler_params=pltpu.CompilerParams(
                dimension_semantics=("parallel",),
                vmem_limit_bytes=_vmem_limit(1 if single_buffer_weights else 2)),
            cost_estimate=cost,
        )

    try:
        out = build(True)(x, w2d, *weight_args)
    except Exception:
        # Fallback for Pallas versions that reject pipeline_mode=Buffered(1):
        # identical semantics, default (double) buffering of resident weights.
        out = build(False)(x, w2d, *weight_args)

    return out[:, :L]


def init_params(key, hidden_size, label_dim, num_patches):
    ks = jax.random.split(key, 8)
    scale = 0.02
    return {
        # map_weight: Linear(P,H) -> ReLU -> LN(H) -> Linear(H,H)
        "mw1_w": scale * jax.random.normal(ks[0], (num_patches, hidden_size), jnp.float32),
        "mw1_b": scale * jax.random.normal(ks[1], (1, hidden_size), jnp.float32),
        "mw_g": jnp.ones((1, hidden_size), jnp.float32),
        "mw_b": jnp.zeros((1, hidden_size), jnp.float32),
        "mw2_w": scale * jax.random.normal(ks[2], (hidden_size, hidden_size), jnp.float32),
        "mw2_b": scale * jax.random.normal(ks[3], (1, hidden_size), jnp.float32),
        # net: Linear(H,H) -> ReLU -> LN(H) -> Linear(H,label_dim)
        "n1_w": scale * jax.random.normal(ks[4], (hidden_size, hidden_size), jnp.float32),
        "n1_b": scale * jax.random.normal(ks[5], (1, hidden_size), jnp.float32),
        "n_g": jnp.ones((1, hidden_size), jnp.float32),
        "n_b": jnp.zeros((1, hidden_size), jnp.float32),
        "n2_w": scale * jax.random.normal(ks[6], (hidden_size, label_dim), jnp.float32),
        "n2_b": scale * jax.random.normal(ks[7], (1, label_dim), jnp.float32),
    }


def _reference(input_, weight, p, eps=1e-12):
    def ln(x, g, b):
        mu = jnp.mean(x, axis=-1, keepdims=True)
        var = jnp.mean((x - mu) ** 2, axis=-1, keepdims=True)
        return (x - mu) / jnp.sqrt(var + eps) * g + b

    w = jnp.squeeze(weight, axis=-1)
    h = jnp.maximum(w @ p["mw1_w"] + p["mw1_b"], 0.0)
    h = ln(h, p["mw_g"], p["mw_b"])
    h = h @ p["mw2_w"] + p["mw2_b"]
    y = input_ + h
    y = jnp.maximum(y @ p["n1_w"] + p["n1_b"], 0.0)
    y = ln(y, p["n_g"], p["n_b"])
    return y @ p["n2_w"] + p["n2_b"]


if __name__ == "__main__":
    batch, seq = 2, 8
    hidden_size, label_dim, num_patches = 32, 8, 16
    N = batch * seq

    key = jax.random.PRNGKey(0)
    k_in, k_w, k_p = jax.random.split(key, 3)

    input_ = jax.random.normal(k_in, (N, hidden_size), jnp.float32)
    weight = jax.random.normal(k_w, (N, num_patches, 1), jnp.float32)
    params = init_params(k_p, hidden_size, label_dim, num_patches)

    ref = _reference(input_, weight, params)

    # Exact-precision path (f32 matmuls) -- tight correctness check.
    out_f32 = weighted_masked_image_modeling(
        input_, weight, params, matmul_dtype=jnp.float32)
    out_f32 = jax.block_until_ready(out_f32)
    assert out_f32.shape == (N, label_dim)
    assert jnp.allclose(out_f32, ref, atol=5e-3, rtol=5e-3), "f32 mismatch vs reference"

    # Performance path (bf16 matmul operands, f32 accumulate) -- looser check.
    out_bf16 = weighted_masked_image_modeling(
        input_, weight, params, matmul_dtype=jnp.bfloat16)
    out_bf16 = jax.block_until_ready(out_bf16)
    assert out_bf16.shape == (N, label_dim)
    assert jnp.allclose(out_bf16, ref, atol=5e-2, rtol=5e-2), "bf16 mismatch vs reference"

    print("KERNEL_OK")
</pallas_src>

<mosaic_0001>
module attributes {stable_mosaic.version = 11 : i64} {
  func.func @wmim_kernel(%arg0: i32, %arg1: memref<8x128xf32, #tpu.memory_space<vmem>>, %arg2: memref<8x128xf32, #tpu.memory_space<vmem>>, %arg3: memref<128x128xf32, #tpu.memory_space<vmem>>, %arg4: memref<1x128xf32, #tpu.memory_space<vmem>>, %arg5: memref<1x128xf32, #tpu.memory_space<vmem>>, %arg6: memref<1x128xf32, #tpu.memory_space<vmem>>, %arg7: memref<128x128xf32, #tpu.memory_space<vmem>>, %arg8: memref<1x128xf32, #tpu.memory_space<vmem>>, %arg9: memref<128x128xf32, #tpu.memory_space<vmem>>, %arg10: memref<1x128xf32, #tpu.memory_space<vmem>>, %arg11: memref<1x128xf32, #tpu.memory_space<vmem>>, %arg12: memref<1x128xf32, #tpu.memory_space<vmem>>, %arg13: memref<128x128xf32, #tpu.memory_space<vmem>>, %arg14: memref<1x128xf32, #tpu.memory_space<vmem>>, %arg15: memref<8x128xf32, #tpu.memory_space<vmem>>) attributes {dimension_semantics = [#tpu.dimension_semantics<parallel>], iteration_bounds = array<i64: 2>, scalar_prefetch = 0 : i64, scratch_operands = 0 : i64, tpu.core_type = #tpu.core_type<tc>, window_params = [{transform_indices = @transform_0, window_bounds = array<i64: 8, 128>}, {transform_indices = @transform_1, window_bounds = array<i64: 8, 128>}, {pipeline_mode = #tpu.pipeline_mode<synchronous>, transform_indices = @transform_2, window_bounds = array<i64: 128, 128>}, {pipeline_mode = #tpu.pipeline_mode<synchronous>, transform_indices = @transform_3, window_bounds = array<i64: 1, 128>}, {pipeline_mode = #tpu.pipeline_mode<synchronous>, transform_indices = @transform_4, window_bounds = array<i64: 1, 128>}, {pipeline_mode = #tpu.pipeline_mode<synchronous>, transform_indices = @transform_5, window_bounds = array<i64: 1, 128>}, {pipeline_mode = #tpu.pipeline_mode<synchronous>, transform_indices = @transform_6, window_bounds = array<i64: 128, 128>}, {pipeline_mode = #tpu.pipeline_mode<synchronous>, transform_indices = @transform_7, window_bounds = array<i64: 1, 128>}, {pipeline_mode = #tpu.pipeline_mode<synchronous>, transform_indices = @transform_8, window_bounds = array<i64: 128, 128>}, {pipeline_mode = #tpu.pipeline_mode<synchronous>, transform_indices = @transform_9, window_bounds = array<i64: 1, 128>}, {pipeline_mode = #tpu.pipeline_mode<synchronous>, transform_indices = @transform_10, window_bounds = array<i64: 1, 128>}, {pipeline_mode = #tpu.pipeline_mode<synchronous>, transform_indices = @transform_11, window_bounds = array<i64: 1, 128>}, {pipeline_mode = #tpu.pipeline_mode<synchronous>, transform_indices = @transform_12, window_bounds = array<i64: 128, 128>}, {pipeline_mode = #tpu.pipeline_mode<synchronous>, transform_indices = @transform_13, window_bounds = array<i64: 1, 128>}, {transform_indices = @transform_14, window_bounds = array<i64: 8, 128>}]} {
    %c0 = arith.constant 0 : index
    %c0_0 = arith.constant 0 : index
    %0 = vector.load %arg2[%c0, %c0_0] : memref<8x128xf32, #tpu.memory_space<vmem>>, vector<8x128xf32>
    %c0_1 = arith.constant 0 : index
    %c0_2 = arith.constant 0 : index
    %1 = vector.load %arg3[%c0_1, %c0_2] : memref<128x128xf32, #tpu.memory_space<vmem>>, vector<128x128xf32>
    %cst = arith.constant dense<0.000000e+00> : vector<8x128xf32>
    %2 = tpu.matmul %0, %1, %cst {dimension_numbers = #tpu.dot_dimension_numbers<[1], [0], [0], [1], [0, 0, 1, 1], [], []>} : vector<8x128xf32>, vector<128x128xf32>, vector<8x128xf32> -> vector<8x128xf32>
    %c0_3 = arith.constant 0 : index
    %c0_4 = arith.constant 0 : index
    %3 = vector.load %arg4[%c0_3, %c0_4] : memref<1x128xf32, #tpu.memory_space<vmem>>, vector<1x128xf32>
    %4 = vector.broadcast %3 : vector<1x128xf32> to vector<8x128xf32>
    %5 = arith.addf %2, %4 : vector<8x128xf32>
    %cst_5 = arith.constant 0.000000e+00 : f32
    %6 = vector.broadcast %cst_5 : f32 to vector<8x128xf32>
    %7 = arith.maximumf %5, %6 : vector<8x128xf32>
    %c0_6 = arith.constant 0 : index
    %c0_7 = arith.constant 0 : index
    %8 = vector.load %arg5[%c0_6, %c0_7] : memref<1x128xf32, #tpu.memory_space<vmem>>, vector<1x128xf32>
    %c0_8 = arith.constant 0 : index
    %c0_9 = arith.constant 0 : index
    %9 = vector.load %arg6[%c0_8, %c0_9] : memref<1x128xf32, #tpu.memory_space<vmem>>, vector<1x128xf32>
    %cst_10 = arith.constant dense<0.000000e+00> : vector<8xf32>
    %10 = vector.multi_reduction <add>, %7, %cst_10 [1] : vector<8x128xf32> to vector<8xf32>
    %11 = vector.shape_cast %10 : vector<8xf32> to vector<8x1xf32>
    %cst_11 = arith.constant 3.125000e-02 : f32
    %12 = vector.broadcast %cst_11 : f32 to vector<8x1xf32>
    %13 = arith.mulf %11, %12 : vector<8x1xf32>
    %14 = vector.broadcast %13 : vector<8x1xf32> to vector<8x128xf32>
    %15 = arith.subf %7, %14 : vector<8x128xf32>
    %16 = tpu.iota {dimensions = array<i32: 1>} : vector<8x128xi32>
    %c32_i32 = arith.constant 32 : i32
    %17 = vector.broadcast %c32_i32 : i32 to vector<8x128xi32>
    %18 = arith.cmpi slt, %16, %17 : vector<8x128xi32>
    %cst_12 = arith.constant 0.000000e+00 : f32
    %19 = vector.broadcast %cst_12 : f32 to vector<8x128xf32>
    %20 = arith.select %18, %15, %19 : vector<8x128xi1>, vector<8x128xf32>
    %21 = arith.mulf %20, %20 : vector<8x128xf32>
    %cst_13 = arith.constant dense<0.000000e+00> : vector<8xf32>
    %22 = vector.multi_reduction <add>, %21, %cst_13 [1] : vector<8x128xf32> to vector<8xf32>
    %23 = vector.shape_cast %22 : vector<8xf32> to vector<8x1xf32>
    %cst_14 = arith.constant 3.125000e-02 : f32
    %24 = vector.broadcast %cst_14 : f32 to vector<8x1xf32>
    %25 = arith.mulf %23, %24 : vector<8x1xf32>
    %cst_15 = arith.constant 9.99999996E-13 : f32
    %26 = vector.broadcast %cst_15 : f32 to vector<8x1xf32>
    %27 = arith.addf %25, %26 : vector<8x1xf32>
    %28 = math.rsqrt %27 : vector<8x1xf32>
    %29 = vector.broadcast %28 : vector<8x1xf32> to vector<8x128xf32>
    %30 = vector.broadcast %8 : vector<1x128xf32> to vector<8x128xf32>
    %31 = arith.mulf %29, %30 : vector<8x128xf32>
    %32 = arith.mulf %15, %31 : vector<8x128xf32>
    %33 = vector.broadcast %9 : vector<1x128xf32> to vector<8x128xf32>
    %34 = arith.addf %32, %33 : vector<8x128xf32>
    %c0_16 = arith.constant 0 : index
    %c0_17 = arith.constant 0 : index
    %35 = vector.load %arg7[%c0_16, %c0_17] : memref<128x128xf32, #tpu.memory_space<vmem>>, vector<128x128xf32>
    %cst_18 = arith.constant dense<0.000000e+00> : vector<8x128xf32>
    %36 = tpu.matmul %34, %35, %cst_18 {dimension_numbers = #tpu.dot_dimension_numbers<[1], [0], [0], [1], [0, 0, 1, 1], [], []>} : vector<8x128xf32>, vector<128x128xf32>, vector<8x128xf32> -> vector<8x128xf32>
    %c0_19 = arith.constant 0 : index
    %c0_20 = arith.constant 0 : index
    %37 = vector.load %arg8[%c0_19, %c0_20] : memref<1x128xf32, #tpu.memory_space<vmem>>, vector<1x128xf32>
    %38 = vector.broadcast %37 : vector<1x128xf32> to vector<8x128xf32>
    %39 = arith.addf %36, %38 : vector<8x128xf32>
    %c0_21 = arith.constant 0 : index
    %c0_22 = arith.constant 0 : index
    %40 = vector.load %arg1[%c0_21, %c0_22] : memref<8x128xf32, #tpu.memory_space<vmem>>, vector<8x128xf32>
    %41 = arith.addf %40, %39 : vector<8x128xf32>
    %c0_23 = arith.constant 0 : index
    %c0_24 = arith.constant 0 : index
    %42 = vector.load %arg9[%c0_23, %c0_24] : memref<128x128xf32, #tpu.memory_space<vmem>>, vector<128x128xf32>
    %cst_25 = arith.constant dense<0.000000e+00> : vector<8x128xf32>
    %43 = tpu.matmul %41, %42, %cst_25 {dimension_numbers = #tpu.dot_dimension_numbers<[1], [0], [0], [1], [0, 0, 1, 1], [], []>} : vector<8x128xf32>, vector<128x128xf32>, vector<8x128xf32> -> vector<8x128xf32>
    %c0_26 = arith.constant 0 : index
    %c0_27 = arith.constant 0 : index
    %44 = vector.load %arg10[%c0_26, %c0_27] : memref<1x128xf32, #tpu.memory_space<vmem>>, vector<1x128xf32>
    %45 = vector.broadcast %44 : vector<1x128xf32> to vector<8x128xf32>
    %46 = arith.addf %43, %45 : vector<8x128xf32>
    %cst_28 = arith.constant 0.000000e+00 : f32
    %47 = vector.broadcast %cst_28 : f32 to vector<8x128xf32>
    %48 = arith.maximumf %46, %47 : vector<8x128xf32>
    %c0_29 = arith.constant 0 : index
    %c0_30 = arith.constant 0 : index
    %49 = vector.load %arg11[%c0_29, %c0_30] : memref<1x128xf32, #tpu.memory_space<vmem>>, vector<1x128xf32>
    %c0_31 = arith.constant 0 : index
    %c0_32 = arith.constant 0 : index
    %50 = vector.load %arg12[%c0_31, %c0_32] : memref<1x128xf32, #tpu.memory_space<vmem>>, vector<1x128xf32>
    %cst_33 = arith.constant dense<0.000000e+00> : vector<8xf32>
    %51 = vector.multi_reduction <add>, %48, %cst_33 [1] : vector<8x128xf32> to vector<8xf32>
    %52 = vector.shape_cast %51 : vector<8xf32> to vector<8x1xf32>
    %cst_34 = arith.constant 3.125000e-02 : f32
    %53 = vector.broadcast %cst_34 : f32 to vector<8x1xf32>
    %54 = arith.mulf %52, %53 : vector<8x1xf32>
    %55 = vector.broadcast %54 : vector<8x1xf32> to vector<8x128xf32>
    %56 = arith.subf %48, %55 : vector<8x128xf32>
    %57 = tpu.iota {dimensions = array<i32: 1>} : vector<8x128xi32>
    %c32_i32_35 = arith.constant 32 : i32
    %58 = vector.broadcast %c32_i32_35 : i32 to vector<8x128xi32>
    %59 = arith.cmpi slt, %57, %58 : vector<8x128xi32>
    %cst_36 = arith.constant 0.000000e+00 : f32
    %60 = vector.broadcast %cst_36 : f32 to vector<8x128xf32>
    %61 = arith.select %59, %56, %60 : vector<8x128xi1>, vector<8x128xf32>
    %62 = arith.mulf %61, %61 : vector<8x128xf32>
    %cst_37 = arith.constant dense<0.000000e+00> : vector<8xf32>
    %63 = vector.multi_reduction <add>, %62, %cst_37 [1] : vector<8x128xf32> to vector<8xf32>
    %64 = vector.shape_cast %63 : vector<8xf32> to vector<8x1xf32>
    %cst_38 = arith.constant 3.125000e-02 : f32
    %65 = vector.broadcast %cst_38 : f32 to vector<8x1xf32>
    %66 = arith.mulf %64, %65 : vector<8x1xf32>
    %cst_39 = arith.constant 9.99999996E-13 : f32
    %67 = vector.broadcast %cst_39 : f32 to vector<8x1xf32>
    %68 = arith.addf %66, %67 : vector<8x1xf32>
    %69 = math.rsqrt %68 : vector<8x1xf32>
    %70 = vector.broadcast %69 : vector<8x1xf32> to vector<8x128xf32>
    %71 = vector.broadcast %49 : vector<1x128xf32> to vector<8x128xf32>
    %72 = arith.mulf %70, %71 : vector<8x128xf32>
    %73 = arith.mulf %56, %72 : vector<8x128xf32>
    %74 = vector.broadcast %50 : vector<1x128xf32> to vector<8x128xf32>
    %75 = arith.addf %73, %74 : vector<8x128xf32>
    %c0_40 = arith.constant 0 : index
    %c0_41 = arith.constant 0 : index
    %76 = vector.load %arg13[%c0_40, %c0_41] : memref<128x128xf32, #tpu.memory_space<vmem>>, vector<128x128xf32>
    %cst_42 = arith.constant dense<0.000000e+00> : vector<8x128xf32>
    %77 = tpu.matmul %75, %76, %cst_42 {dimension_numbers = #tpu.dot_dimension_numbers<[1], [0], [0], [1], [0, 0, 1, 1], [], []>} : vector<8x128xf32>, vector<128x128xf32>, vector<8x128xf32> -> vector<8x128xf32>
    %c0_43 = arith.constant 0 : index
    %c0_44 = arith.constant 0 : index
    %78 = vector.load %arg14[%c0_43, %c0_44] : memref<1x128xf32, #tpu.memory_space<vmem>>, vector<1x128xf32>
    %79 = vector.broadcast %78 : vector<1x128xf32> to vector<8x128xf32>
    %80 = arith.addf %77, %79 : vector<8x128xf32>
    %c0_45 = arith.constant 0 : index
    %c0_46 = arith.constant 0 : index
    %81 = vector.load %arg15[%c0_45, %c0_46] : memref<8x128xf32, #tpu.memory_space<vmem>>, vector<8x128xf32>
    tpu.vector_store %arg15[%c0_45, %c0_46], %80 {strides = array<i32>} : memref<8x128xf32, #tpu.memory_space<vmem>>, vector<8x128xf32>,
    return
  }
  func.func @transform_0(%arg0: i32) -> (i32, i32) {
    %c0_i32 = arith.constant 0 : i32
    %c0_i32_0 = arith.constant 0 : i32
    return %arg0, %c0_i32 : i32, i32
  }
  func.func @transform_1(%arg0: i32) -> (i32, i32) {
    %c0_i32 = arith.constant 0 : i32
    %c0_i32_0 = arith.constant 0 : i32
    return %arg0, %c0_i32 : i32, i32
  }
  func.func @transform_2(%arg0: i32) -> (i32, i32) {
    %c0_i32 = arith.constant 0 : i32
    %c0_i32_0 = arith.constant 0 : i32
    %c0_i32_1 = arith.constant 0 : i32
    return %c0_i32, %c0_i32_0 : i32, i32
  }
  func.func @transform_3(%arg0: i32) -> (i32, i32) {
    %c0_i32 = arith.constant 0 : i32
    %c0_i32_0 = arith.constant 0 : i32
    %c0_i32_1 = arith.constant 0 : i32
    return %c0_i32, %c0_i32_0 : i32, i32
  }
  func.func @transform_4(%arg0: i32) -> (i32, i32) {
    %c0_i32 = arith.constant 0 : i32
    %c0_i32_0 = arith.constant 0 : i32
    %c0_i32_1 = arith.constant 0 : i32
    return %c0_i32, %c0_i32_0 : i32, i32
  }
  func.func @transform_5(%arg0: i32) -> (i32, i32) {
    %c0_i32 = arith.constant 0 : i32
    %c0_i32_0 = arith.constant 0 : i32
    %c0_i32_1 = arith.constant 0 : i32
    return %c0_i32, %c0_i32_0 : i32, i32
  }
  func.func @transform_6(%arg0: i32) -> (i32, i32) {
    %c0_i32 = arith.constant 0 : i32
    %c0_i32_0 = arith.constant 0 : i32
    %c0_i32_1 = arith.constant 0 : i32
    return %c0_i32, %c0_i32_0 : i32, i32
  }
  func.func @transform_7(%arg0: i32) -> (i32, i32) {
    %c0_i32 = arith.constant 0 : i32
    %c0_i32_0 = arith.constant 0 : i32
    %c0_i32_1 = arith.constant 0 : i32
    return %c0_i32, %c0_i32_0 : i32, i32
  }
  func.func @transform_8(%arg0: i32) -> (i32, i32) {
    %c0_i32 = arith.constant 0 : i32
    %c0_i32_0 = arith.constant 0 : i32
    %c0_i32_1 = arith.constant 0 : i32
    return %c0_i32, %c0_i32_0 : i32, i32
  }
  func.func @transform_9(%arg0: i32) -> (i32, i32) {
    %c0_i32 = arith.constant 0 : i32
    %c0_i32_0 = arith.constant 0 : i32
    %c0_i32_1 = arith.constant 0 : i32
    return %c0_i32, %c0_i32_0 : i32, i32
  }
  func.func @transform_10(%arg0: i32) -> (i32, i32) {
    %c0_i32 = arith.constant 0 : i32
    %c0_i32_0 = arith.constant 0 : i32
    %c0_i32_1 = arith.constant 0 : i32
    return %c0_i32, %c0_i32_0 : i32, i32
  }
  func.func @transform_11(%arg0: i32) -> (i32, i32) {
    %c0_i32 = arith.constant 0 : i32
    %c0_i32_0 = arith.constant 0 : i32
    %c0_i32_1 = arith.constant 0 : i32
    return %c0_i32, %c0_i32_0 : i32, i32
  }
  func.func @transform_12(%arg0: i32) -> (i32, i32) {
    %c0_i32 = arith.constant 0 : i32
    %c0_i32_0 = arith.constant 0 : i32
    %c0_i32_1 = arith.constant 0 : i32
    return %c0_i32, %c0_i32_0 : i32, i32
  }
  func.func @transform_13(%arg0: i32) -> (i32, i32) {
    %c0_i32 = arith.constant 0 : i32
    %c0_i32_0 = arith.constant 0 : i32
    %c0_i32_1 = arith.constant 0 : i32
    return %c0_i32, %c0_i32_0 : i32, i32
  }
  func.func @transform_14(%arg0: i32) -> (i32, i32) {
    %c0_i32 = arith.constant 0 : i32
    %c0_i32_0 = arith.constant 0 : i32
    return %arg0, %c0_i32 : i32, i32
  }
}

module attributes {stable_mosaic.version = 11 : i64} {
  func.func @wmim_kernel(%arg0: i32, %arg1: memref<8x128xf32, #tpu.memory_space<vmem>>, %arg2: memref<8x128xf32, #tpu.memory_space<vmem>>, %arg3: memref<128x128xf32, #tpu.memory_space<vmem>>, %arg4: memref<1x128xf32, #tpu.memory_space<vmem>>, %arg5: memref<1x128xf32, #tpu.memory_space<vmem>>, %arg6: memref<1x128xf32, #tpu.memory_space<vmem>>, %arg7: memref<128x128xf32, #tpu.memory_space<vmem>>, %arg8: memref<1x128xf32, #tpu.memory_space<vmem>>, %arg9: memref<128x128xf32, #tpu.memory_space<vmem>>, %arg10: memref<1x128xf32, #tpu.memory_space<vmem>>, %arg11: memref<1x128xf32, #tpu.memory_space<vmem>>, %arg12: memref<1x128xf32, #tpu.memory_space<vmem>>, %arg13: memref<128x128xf32, #tpu.memory_space<vmem>>, %arg14: memref<1x128xf32, #tpu.memory_space<vmem>>, %arg15: memref<8x128xf32, #tpu.memory_space<vmem>>) attributes {dimension_semantics = [#tpu.dimension_semantics<parallel>], iteration_bounds = array<i64: 2>, scalar_prefetch = 0 : i64, scratch_operands = 0 : i64, tpu.core_type = #tpu.core_type<tc>, window_params = [{transform_indices = @transform_0, window_bounds = array<i64: 8, 128>}, {transform_indices = @transform_1, window_bounds = array<i64: 8, 128>}, {pipeline_mode = #tpu.pipeline_mode<synchronous>, transform_indices = @transform_2, window_bounds = array<i64: 128, 128>}, {pipeline_mode = #tpu.pipeline_mode<synchronous>, transform_indices = @transform_3, window_bounds = array<i64: 1, 128>}, {pipeline_mode = #tpu.pipeline_mode<synchronous>, transform_indices = @transform_4, window_bounds = array<i64: 1, 128>}, {pipeline_mode = #tpu.pipeline_mode<synchronous>, transform_indices = @transform_5, window_bounds = array<i64: 1, 128>}, {pipeline_mode = #tpu.pipeline_mode<synchronous>, transform_indices = @transform_6, window_bounds = array<i64: 128, 128>}, {pipeline_mode = #tpu.pipeline_mode<synchronous>, transform_indices = @transform_7, window_bounds = array<i64: 1, 128>}, {pipeline_mode = #tpu.pipeline_mode<synchronous>, transform_indices = @transform_8, window_bounds = array<i64: 128, 128>}, {pipeline_mode = #tpu.pipeline_mode<synchronous>, transform_indices = @transform_9, window_bounds = array<i64: 1, 128>}, {pipeline_mode = #tpu.pipeline_mode<synchronous>, transform_indices = @transform_10, window_bounds = array<i64: 1, 128>}, {pipeline_mode = #tpu.pipeline_mode<synchronous>, transform_indices = @transform_11, window_bounds = array<i64: 1, 128>}, {pipeline_mode = #tpu.pipeline_mode<synchronous>, transform_indices = @transform_12, window_bounds = array<i64: 128, 128>}, {pipeline_mode = #tpu.pipeline_mode<synchronous>, transform_indices = @transform_13, window_bounds = array<i64: 1, 128>}, {transform_indices = @transform_14, window_bounds = array<i64: 8, 128>}]} {
    %c0 = arith.constant 0 : index
    %c0_0 = arith.constant 0 : index
    %0 = vector.load %arg2[%c0, %c0_0] : memref<8x128xf32, #tpu.memory_space<vmem>>, vector<8x128xf32>
    %c0_1 = arith.constant 0 : index
    %c0_2 = arith.constant 0 : index
    %1 = vector.load %arg3[%c0_1, %c0_2] : memref<128x128xf32, #tpu.memory_space<vmem>>, vector<128x128xf32>
    %cst = arith.constant dense<0.000000e+00> : vector<8x128xf32>
    %2 = tpu.matmul %0, %1, %cst {dimension_numbers = #tpu.dot_dimension_numbers<[1], [0], [0], [1], [0, 0, 1, 1], [], []>} : vector<8x128xf32>, vector<128x128xf32>, vector<8x128xf32> -> vector<8x128xf32>
    %c0_3 = arith.constant 0 : index
    %c0_4 = arith.constant 0 : index
    %3 = vector.load %arg4[%c0_3, %c0_4] : memref<1x128xf32, #tpu.memory_space<vmem>>, vector<1x128xf32>
    %4 = vector.broadcast %3 : vector<1x128xf32> to vector<8x128xf32>
    %5 = arith.addf %2, %4 : vector<8x128xf32>
    %cst_5 = arith.constant 0.000000e+00 : f32
    %6 = vector.broadcast %cst_5 : f32 to vector<8x128xf32>
    %7 = arith.maximumf %5, %6 : vector<8x128xf32>
    %c0_6 = arith.constant 0 : index
    %c0_7 = arith.constant 0 : index
    %8 = vector.load %arg5[%c0_6, %c0_7] : memref<1x128xf32, #tpu.memory_space<vmem>>, vector<1x128xf32>
    %c0_8 = arith.constant 0 : index
    %c0_9 = arith.constant 0 : index
    %9 = vector.load %arg6[%c0_8, %c0_9] : memref<1x128xf32, #tpu.memory_space<vmem>>, vector<1x128xf32>
    %cst_10 = arith.constant dense<0.000000e+00> : vector<8xf32>
    %10 = vector.multi_reduction <add>, %7, %cst_10 [1] : vector<8x128xf32> to vector<8xf32>
    %11 = vector.shape_cast %10 : vector<8xf32> to vector<8x1xf32>
    %cst_11 = arith.constant 3.125000e-02 : f32
    %12 = vector.broadcast %cst_11 : f32 to vector<8x1xf32>
    %13 = arith.mulf %11, %12 : vector<8x1xf32>
    %14 = vector.broadcast %13 : vector<8x1xf32> to vector<8x128xf32>
    %15 = arith.subf %7, %14 : vector<8x128xf32>
    %16 = tpu.iota {dimensions = array<i32: 1>} : vector<8x128xi32>
    %c32_i32 = arith.constant 32 : i32
    %17 = vector.broadcast %c32_i32 : i32 to vector<8x128xi32>
    %18 = arith.cmpi slt, %16, %17 : vector<8x128xi32>
    %cst_12 = arith.constant 0.000000e+00 : f32
    %19 = vector.broadcast %cst_12 : f32 to vector<8x128xf32>
    %20 = arith.select %18, %15, %19 : vector<8x128xi1>, vector<8x128xf32>
    %21 = arith.mulf %20, %20 : vector<8x128xf32>
    %cst_13 = arith.constant dense<0.000000e+00> : vector<8xf32>
    %22 = vector.multi_reduction <add>, %21, %cst_13 [1] : vector<8x128xf32> to vector<8xf32>
    %23 = vector.shape_cast %22 : vector<8xf32> to vector<8x1xf32>
    %cst_14 = arith.constant 3.125000e-02 : f32
    %24 = vector.broadcast %cst_14 : f32 to vector<8x1xf32>
    %25 = arith.mulf %23, %24 : vector<8x1xf32>
    %cst_15 = arith.constant 9.99999996E-13 : f32
    %26 = vector.broadcast %cst_15 : f32 to vector<8x1xf32>
    %27 = arith.addf %25, %26 : vector<8x1xf32>
    %28 = math.rsqrt %27 : vector<8x1xf32>
    %29 = vector.broadcast %28 : vector<8x1xf32> to vector<8x128xf32>
    %30 = vector.broadcast %8 : vector<1x128xf32> to vector<8x128xf32>
    %31 = arith.mulf %29, %30 : vector<8x128xf32>
    %32 = arith.mulf %15, %31 : vector<8x128xf32>
    %33 = vector.broadcast %9 : vector<1x128xf32> to vector<8x128xf32>
    %34 = arith.addf %32, %33 : vector<8x128xf32>
    %c0_16 = arith.constant 0 : index
    %c0_17 = arith.constant 0 : index
    %35 = vector.load %arg7[%c0_16, %c0_17] : memref<128x128xf32, #tpu.memory_space<vmem>>, vector<128x128xf32>
    %cst_18 = arith.constant dense<0.000000e+00> : vector<8x128xf32>
    %36 = tpu.matmul %34, %35, %cst_18 {dimension_numbers = #tpu.dot_dimension_numbers<[1], [0], [0], [1], [0, 0, 1, 1], [], []>} : vector<8x128xf32>, vector<128x128xf32>, vector<8x128xf32> -> vector<8x128xf32>
    %c0_19 = arith.constant 0 : index
    %c0_20 = arith.constant 0 : index
    %37 = vector.load %arg8[%c0_19, %c0_20] : memref<1x128xf32, #tpu.memory_space<vmem>>, vector<1x128xf32>
    %38 = vector.broadcast %37 : vector<1x128xf32> to vector<8x128xf32>
    %39 = arith.addf %36, %38 : vector<8x128xf32>
    %c0_21 = arith.constant 0 : index
    %c0_22 = arith.constant 0 : index
    %40 = vector.load %arg1[%c0_21, %c0_22] : memref<8x128xf32, #tpu.memory_space<vmem>>, vector<8x128xf32>
    %41 = arith.addf %40, %39 : vector<8x128xf32>
    %c0_23 = arith.constant 0 : index
    %c0_24 = arith.constant 0 : index
    %42 = vector.load %arg9[%c0_23, %c0_24] : memref<128x128xf32, #tpu.memory_space<vmem>>, vector<128x128xf32>
    %cst_25 = arith.constant dense<0.000000e+00> : vector<8x128xf32>
    %43 = tpu.matmul %41, %42, %cst_25 {dimension_numbers = #tpu.dot_dimension_numbers<[1], [0], [0], [1], [0, 0, 1, 1], [], []>} : vector<8x128xf32>, vector<128x128xf32>, vector<8x128xf32> -> vector<8x128xf32>
    %c0_26 = arith.constant 0 : index
    %c0_27 = arith.constant 0 : index
    %44 = vector.load %arg10[%c0_26, %c0_27] : memref<1x128xf32, #tpu.memory_space<vmem>>, vector<1x128xf32>
    %45 = vector.broadcast %44 : vector<1x128xf32> to vector<8x128xf32>
    %46 = arith.addf %43, %45 : vector<8x128xf32>
    %cst_28 = arith.constant 0.000000e+00 : f32
    %47 = vector.broadcast %cst_28 : f32 to vector<8x128xf32>
    %48 = arith.maximumf %46, %47 : vector<8x128xf32>
    %c0_29 = arith.constant 0 : index
    %c0_30 = arith.constant 0 : index
    %49 = vector.load %arg11[%c0_29, %c0_30] : memref<1x128xf32, #tpu.memory_space<vmem>>, vector<1x128xf32>
    %c0_31 = arith.constant 0 : index
    %c0_32 = arith.constant 0 : index
    %50 = vector.load %arg12[%c0_31, %c0_32] : memref<1x128xf32, #tpu.memory_space<vmem>>, vector<1x128xf32>
    %cst_33 = arith.constant dense<0.000000e+00> : vector<8xf32>
    %51 = vector.multi_reduction <add>, %48, %cst_33 [1] : vector<8x128xf32> to vector<8xf32>
    %52 = vector.shape_cast %51 : vector<8xf32> to vector<8x1xf32>
    %cst_34 = arith.constant 3.125000e-02 : f32
    %53 = vector.broadcast %cst_34 : f32 to vector<8x1xf32>
    %54 = arith.mulf %52, %53 : vector<8x1xf32>
    %55 = vector.broadcast %54 : vector<8x1xf32> to vector<8x128xf32>
    %56 = arith.subf %48, %55 : vector<8x128xf32>
    %57 = tpu.iota {dimensions = array<i32: 1>} : vector<8x128xi32>
    %c32_i32_35 = arith.constant 32 : i32
    %58 = vector.broadcast %c32_i32_35 : i32 to vector<8x128xi32>
    %59 = arith.cmpi slt, %57, %58 : vector<8x128xi32>
    %cst_36 = arith.constant 0.000000e+00 : f32
    %60 = vector.broadcast %cst_36 : f32 to vector<8x128xf32>
    %61 = arith.select %59, %56, %60 : vector<8x128xi1>, vector<8x128xf32>
    %62 = arith.mulf %61, %61 : vector<8x128xf32>
    %cst_37 = arith.constant dense<0.000000e+00> : vector<8xf32>
    %63 = vector.multi_reduction <add>, %62, %cst_37 [1] : vector<8x128xf32> to vector<8xf32>
    %64 = vector.shape_cast %63 : vector<8xf32> to vector<8x1xf32>
    %cst_38 = arith.constant 3.125000e-02 : f32
    %65 = vector.broadcast %cst_38 : f32 to vector<8x1xf32>
    %66 = arith.mulf %64, %65 : vector<8x1xf32>
    %cst_39 = arith.constant 9.99999996E-13 : f32
    %67 = vector.broadcast %cst_39 : f32 to vector<8x1xf32>
    %68 = arith.addf %66, %67 : vector<8x1xf32>
    %69 = math.rsqrt %68 : vector<8x1xf32>
    %70 = vector.broadcast %69 : vector<8x1xf32> to vector<8x128xf32>
    %71 = vector.broadcast %49 : vector<1x128xf32> to vector<8x128xf32>
    %72 = arith.mulf %70, %71 : vector<8x128xf32>
    %73 = arith.mulf %56, %72 : vector<8x128xf32>
    %74 = vector.broadcast %50 : vector<1x128xf32> to vector<8x128xf32>
    %75 = arith.addf %73, %74 : vector<8x128xf32>
    %c0_40 = arith.constant 0 : index
    %c0_41 = arith.constant 0 : index
    %76 = vector.load %arg13[%c0_40, %c0_41] : memref<128x128xf32, #tpu.memory_space<vmem>>, vector<128x128xf32>
    %cst_42 = arith.constant dense<0.000000e+00> : vector<8x128xf32>
    %77 = tpu.matmul %75, %76, %cst_42 {dimension_numbers = #tpu.dot_dimension_numbers<[1], [0], [0], [1], [0, 0, 1, 1], [], []>} : vector<8x128xf32>, vector<128x128xf32>, vector<8x128xf32> -> vector<8x128xf32>
    %c0_43 = arith.constant 0 : index
    %c0_44 = arith.constant 0 : index
    %78 = vector.load %arg14[%c0_43, %c0_44] : memref<1x128xf32, #tpu.memory_space<vmem>>, vector<1x128xf32>
    %79 = vector.broadcast %78 : vector<1x128xf32> to vector<8x128xf32>
    %80 = arith.addf %77, %79 : vector<8x128xf32>
    %c0_45 = arith.constant 0 : index
    %c0_46 = arith.constant 0 : index
    %81 = vector.load %arg15[%c0_45, %c0_46] : memref<8x128xf32, #tpu.memory_space<vmem>>, vector<8x128xf32>
    tpu.vector_store %arg15[%c0_45, %c0_46], %80 {strides = array<i32>} : memref<8x128xf32, #tpu.memory_space<vmem>>, vector<8x128xf32>,
    return
  }
  func.func @transform_0(%arg0: i32) -> (i32, i32) {
    %c0_i32 = arith.constant 0 : i32
    %c0_i32_0 = arith.constant 0 : i32
    return %arg0, %c0_i32 : i32, i32
  }
  func.func @transform_1(%arg0: i32) -> (i32, i32) {
    %c0_i32 = arith.constant 0 : i32
    %c0_i32_0 = arith.constant 0 : i32
    return %arg0, %c0_i32 : i32, i32
  }
  func.func @transform_2(%arg0: i32) -> (i32, i32) {
    %c0_i32 = arith.constant 0 : i32
    %c0_i32_0 = arith.constant 0 : i32
    %c0_i32_1 = arith.constant 0 : i32
    return %c0_i32, %c0_i32_0 : i32, i32
  }
  func.func @transform_3(%arg0: i32) -> (i32, i32) {
    %c0_i32 = arith.constant 0 : i32
    %c0_i32_0 = arith.constant 0 : i32
    %c0_i32_1 = arith.constant 0 : i32
    return %c0_i32, %c0_i32_0 : i32, i32
  }
  func.func @transform_4(%arg0: i32) -> (i32, i32) {
    %c0_i32 = arith.constant 0 : i32
    %c0_i32_0 = arith.constant 0 : i32
    %c0_i32_1 = arith.constant 0 : i32
    return %c0_i32, %c0_i32_0 : i32, i32
  }
  func.func @transform_5(%arg0: i32) -> (i32, i32) {
    %c0_i32 = arith.constant 0 : i32
    %c0_i32_0 = arith.constant 0 : i32
    %c0_i32_1 = arith.constant 0 : i32
    return %c0_i32, %c0_i32_0 : i32, i32
  }
  func.func @transform_6(%arg0: i32) -> (i32, i32) {
    %c0_i32 = arith.constant 0 : i32
    %c0_i32_0 = arith.constant 0 : i32
    %c0_i32_1 = arith.constant 0 : i32
    return %c0_i32, %c0_i32_0 : i32, i32
  }
  func.func @transform_7(%arg0: i32) -> (i32, i32) {
    %c0_i32 = arith.constant 0 : i32
    %c0_i32_0 = arith.constant 0 : i32
    %c0_i32_1 = arith.constant 0 : i32
    return %c0_i32, %c0_i32_0 : i32, i32
  }
  func.func @transform_8(%arg0: i32) -> (i32, i32) {
    %c0_i32 = arith.constant 0 : i32
    %c0_i32_0 = arith.constant 0 : i32
    %c0_i32_1 = arith.constant 0 : i32
    return %c0_i32, %c0_i32_0 : i32, i32
  }
  func.func @transform_9(%arg0: i32) -> (i32, i32) {
    %c0_i32 = arith.constant 0 : i32
    %c0_i32_0 = arith.constant 0 : i32
    %c0_i32_1 = arith.constant 0 : i32
    return %c0_i32, %c0_i32_0 : i32, i32
  }
  func.func @transform_10(%arg0: i32) -> (i32, i32) {
    %c0_i32 = arith.constant 0 : i32
    %c0_i32_0 = arith.constant 0 : i32
    %c0_i32_1 = arith.constant 0 : i32
    return %c0_i32, %c0_i32_0 : i32, i32
  }
  func.func @transform_11(%arg0: i32) -> (i32, i32) {
    %c0_i32 = arith.constant 0 : i32
    %c0_i32_0 = arith.constant 0 : i32
    %c0_i32_1 = arith.constant 0 : i32
    return %c0_i32, %c0_i32_0 : i32, i32
  }
  func.func @transform_12(%arg0: i32) -> (i32, i32) {
    %c0_i32 = arith.constant 0 : i32
    %c0_i32_0 = arith.constant 0 : i32
    %c0_i32_1 = arith.constant 0 : i32
    return %c0_i32, %c0_i32_0 : i32, i32
  }
  func.func @transform_13(%arg0: i32) -> (i32, i32) {
    %c0_i32 = arith.constant 0 : i32
    %c0_i32_0 = arith.constant 0 : i32
    %c0_i32_1 = arith.constant 0 : i32
    return %c0_i32, %c0_i32_0 : i32, i32
  }
  func.func @transform_14(%arg0: i32) -> (i32, i32) {
    %c0_i32 = arith.constant 0 : i32
    %c0_i32_0 = arith.constant 0 : i32
    return %arg0, %c0_i32 : i32, i32
  }
}

</mosaic_0001>

<bundles_post_ra>
// kernel: tpu_custom_call.1
= control target key start
LH: loop header
LB: loop body
LE: loop exit
PB: predicated region body
PF: predicated region fallthrough
CT: control target
= control target key end

     0   :  { %s2355_s0 = inlined_call_operand.hbm [shape: f32[16,128], index: 0, kind: input, shape index: {}]   ;;  %s2356_s1 = inlined_call_operand.hbm [shape: f32[16,128], index: 1, kind: input, shape index: {}]   ;;  %s2357_s2 = inlined_call_operand.hbm [shape: f32[128,128], index: 2, kind: input, shape index: {}]   ;;  %s2358_s3 = inlined_call_operand.vmem [shape: f32[1,128], index: 3, kind: input, shape index: {}]   ;;  %s2359_s4 = inlined_call_operand.vmem [shape: f32[1,128], index: 4, kind: input, shape index: {}]   ;;  %s2360_s5 = inlined_call_operand.vmem [shape: f32[1,128], index: 5, kind: input, shape index: {}]   ;;  %s2361_s6 = inlined_call_operand.hbm [shape: f32[128,128], index: 6, kind: input, shape index: {}]   ;;  %s2362_s7 = inlined_call_operand.vmem [shape: f32[1,128], index: 7, kind: input, shape index: {}]   ;;  %s2363_s8 = inlined_call_operand.hbm [shape: f32[128,128], index: 8, kind: input, shape index: {}]   ;;  %s2364_s9 = inlined_call_operand.vmem [shape: f32[1,128], index: 9, kind: input, shape index: {}]   ;;  %s2365_s10 = inlined_call_operand.vmem [shape: f32[1,128], index: 10, kind: input, shape index: {}]   ;;  %s2366_s11 = inlined_call_operand.vmem [shape: f32[1,128], index: 11, kind: input, shape index: {}]   ;;  %s2367_s12 = inlined_call_operand.hbm [shape: f32[128,128], index: 12, kind: input, shape index: {}]   ;;  %s2368_s13 = inlined_call_operand.vmem [shape: f32[1,128], index: 13, kind: input, shape index: {}]   ;;  %s2369_s14 = inlined_call_operand.hbm [shape: f32[16,128], index: 14, kind: output, shape index: {}]  }
   0x1   :  { %2375 = sst [smem:[#allocation21_spill]] %s2357_s2 }
   0x2   :  { %2376 = sst [smem:[#allocation22_spill]] %s2361_s6 }
   0x3   :  { %2377 = sst [smem:[#allocation23_spill]] %s2362_s7 }
   0x4   :  { %2378 = sst [smem:[#allocation24_spill]] %s2363_s8 }
   0x5   :  { %2379 = sst [smem:[#allocation25_spill]] %s2364_s9 }
   0x6   :  { %2380 = sst [smem:[#allocation26_spill]] %s2365_s10 }
   0x7   :  { %2381 = sst [smem:[#allocation27_spill]] %s2366_s11 }
   0x8   :  { %2382 = sst [smem:[#allocation28_spill]] %s2367_s12 }
   0x9   :  { %2383 = sst [smem:[#allocation29_spill]] %s2368_s13 }
   0xa   :  { %2384 = sst [smem:[#allocation30_spill]] %s2369_s14 }
   0xb   :  { %19 = vsyncpa [#allocation3], 0 }
   0xc   :  { %21 = vsyncpa [#allocation3 + $0x1], 0 }
   0xd   :  { %22 = vsyncpa [#allocation6], 0 }
   0xe   :  { %24 = vsyncpa [#allocation6 + $0x1], 0 }
   0xf   :  { %25 = vsyncpa [#allocation9], 0 }
  0x10   :  { %26 = vsyncpa [#allocation12], 0 }
  0x11   :  { %27 = vsyncpa [#allocation4], 0 }
  0x12   :  { %29 = vsyncpa [#allocation4 + $0x1], 0  ;;  %s1939_s29 = smov 0   ;;  %s1941_s30 = smov 0  }
  0x13   :  { %s1943_s15 = smov 0   ;;  %s1945_s16 = smov 0  }
  0x14 LB: > { %s1852_s17 = smov [#allocation7]   ;;  %s1960_s19 = sadd.s32 4294967295, %s1850_s16   ;;  %s1850_s16 = sphi %s1945_s16, %s2420_s16   ;;  %s1846_s15 = sphi %s1943_s15, %s2419_s15   ;;  %s1842_s30 = sphi %s1941_s30, %s2418_s30   ;;  %s1838_s29 = sphi %s1939_s29, %s2417_s29  }
  0x15   : > { %s382_s18 = sshll.u32 %s1852_s17, 4  ;;  %p1161_p0 = scmp.ge.s32.totalorder %s1850_s16, 1  ;;  %s1965_s18 = int_to_ptr.vmem [resolvable:$true] %s382_s18 }
  0x16   : > { %p2371_p1 = scmp.eq.s32.totalorder %s1960_s19, 0  ;;  %p370_p2 = scmp.lt.s32.totalorder %s1850_s16, 3 }
  0x17   : > { %s1853_s21 = smov [#allocation8]   ;;  %s1854_s24 = smov [#allocation10]  }
  0x18   : > { %p1967_p3 = pnand %p1161_p0, %p370_p2  ;;  %s404_s22 = sshll.u32 %s1853_s21, 4  ;;  %s1980_s22 = int_to_ptr.vmem [resolvable:$true] %s404_s22 }
  0x19   : > { %s420_s25 = sshll.u32 %s1854_s24, 4  ;;  %s2387_s2 = sld [smem:[#allocation21_spill]]  ;;  %s1982_s25 = int_to_ptr.vmem [resolvable:$true] %s420_s25 }
  0x1a   : > { %s2385_s20 = scalar_select %p1967_p3, 1, 0 }
  0x1b   : > { %p1517_p5 = pneg %p1967_p3 }
  0x1d   : > { %p1976_p6 = pnand %p1517_p5, %p2371_p1 }
  0x1f   : > { %s1596_s28 = scalar_lea.hbm %s2387_s2, 2048  ;;  %p1992_p8 = pneg %p1976_p6 }
  0x20   : > { %p1597_p7 = scmp.ne.s32.totalorder %s2387_s2, %s1596_s28  ;;  %p1603_p11 = scmp.lt.u32.totalorder %s1596_s28, %s2387_s2 }
  0x22   : > { %p1599_p9 = pnand %p1992_p8, %p1597_p7 }
  0x24   : > { %p1600_p10 = pneg %p1599_p9 }
  0x26   : > { %p1605_p12 = pnand %p1603_p11, %p1600_p10 }
  0x28   : > { %1608 = shalt.err (!%p1605_p12)
}
  0x29   : > { %s1609_s14 = scalar_lea.vmem %s1965_s18, 2048  ;;  %p1617_p5 = scmp.lt.s32.totalorder %s1965_s18, %s1965_s18 }
  0x2a   : > { %p1610_p13 = scmp.ne.s32.totalorder %s1965_s18, %s1609_s14  ;;  %p1618_p4 = scmp.lt.s32.totalorder %s1609_s14, %s1609_s14 }
  0x2c   : > { %p1612_p0 = pnand %p1610_p13, %p1992_p8  ;;  %p1619_p7 = por %p1618_p4, %p1617_p5 }
  0x2e   : > { %p1613_p2 = pneg %p1612_p0 }
  0x30   : > { %p1620_p9 = pnand %p1619_p7, %p1613_p2 }
  0x32   : > { %1623 = shalt.err (!%p1620_p9)
}
  0x33   : > { %s1855_s26 = smov 128   ;;  %s1856_s13 = smov 8  }
  0x34   : > { %1520 = dma.hbm_to_vmem [thread:$0]  (!%p1976_p6), %s2387_s2, 2048, %s1965_s18, [#allocation6], %s1855_s26, %s1855_s26, %s1856_s13  }
  0x35   : > { %s2389_s6 = sld [smem:[#allocation22_spill]] }
  0x3b   : > { %s1624_s14 = scalar_lea.hbm %s2389_s6, 2048 }
  0x3c   : > { %p1625_p4 = scmp.ne.s32.totalorder %s2389_s6, %s1624_s14  ;;  %p1631_p12 = scmp.lt.u32.totalorder %s1624_s14, %s2389_s6 }
  0x3e   : > { %p1627_p10 = pnand %p1625_p4, %p1992_p8 }
  0x40   : > { %p1628_p11 = pneg %p1627_p10 }
  0x42   : > { %p1633_p13 = pnand %p1631_p12, %p1628_p11 }
  0x44   : > { %1636 = shalt.err (!%p1633_p13)
}
  0x45   : > { %s1637_s18 = scalar_lea.vmem %s1980_s22, 2048  ;;  %p1645_p7 = scmp.lt.s32.totalorder %s1980_s22, %s1980_s22 }
  0x46   : > { %p1638_p0 = scmp.ne.s32.totalorder %s1980_s22, %s1637_s18  ;;  %p1646_p9 = scmp.lt.s32.totalorder %s1637_s18, %s1637_s18 }
  0x48   : > { %p1640_p2 = pnand %p1638_p0, %p1992_p8  ;;  %p1647_p4 = por %p1646_p9, %p1645_p7 }
  0x4a   : > { %p1641_p5 = pneg %p1640_p2 }
  0x4c   : > { %p1648_p10 = pnand %p1647_p4, %p1641_p5 }
  0x4e   : > { %1651 = shalt.err (!%p1648_p10)
}
  0x4f   : > { %1523 = dma.hbm_to_vmem [thread:$0]  (!%p1976_p6), %s2389_s6, 2048, %s1980_s22, [#allocation9], %s1855_s26, %s1855_s26, %s1856_s13  }
  0x50   : > { %s2390_s8 = sld [smem:[#allocation24_spill]] }
  0x56   : > { %s1652_s27 = scalar_lea.hbm %s2390_s8, 2048 }
  0x57   : > { %p1653_p11 = scmp.ne.s32.totalorder %s2390_s8, %s1652_s27  ;;  %p1659_p0 = scmp.lt.u32.totalorder %s1652_s27, %s2390_s8 }
  0x59   : > { %p1655_p12 = pnand %p1653_p11, %p1992_p8 }
  0x5b   : > { %p1656_p13 = pneg %p1655_p12 }
  0x5d   : > { %p1661_p2 = pnand %p1659_p0, %p1656_p13 }
  0x5f   : > { %1664 = shalt.err (!%p1661_p2)
}
  0x60   : > { %s1665_s22 = scalar_lea.vmem %s1982_s25, 2048  ;;  %p1673_p4 = scmp.lt.s32.totalorder %s1982_s25, %s1982_s25 }
  0x61   : > { %p1666_p5 = scmp.ne.s32.totalorder %s1982_s25, %s1665_s22  ;;  %p1674_p10 = scmp.lt.s32.totalorder %s1665_s22, %s1665_s22 }
  0x63   : > { %p1668_p7 = pnand %p1666_p5, %p1992_p8  ;;  %p1675_p11 = por %p1674_p10, %p1673_p4 }
  0x65   : > { %p1669_p9 = pneg %p1668_p7 }
  0x67   : > { %p1676_p12 = pnand %p1675_p11, %p1669_p9 }
  0x69   : > { %1679 = shalt.err (!%p1676_p12)
}
  0x6a   : > { %1526 = dma.hbm_to_vmem [thread:$0]  (!%p1976_p6), %s2390_s8, 2048, %s1982_s25, [#allocation9], %s1855_s26, %s1855_s26, %s1856_s13  }
  0x6b   : > { %s1857_s9 = smov [#allocation11]   ;;  %s2391_s12 = sld [smem:[#allocation28_spill]] }
  0x6c   : > { %s442_s10 = sshll.u32 %s1857_s9, 4  ;;  %s443_s10 = int_to_ptr.vmem [resolvable:$true] %s442_s10 }
  0x71   : > { %s1680_s28 = scalar_lea.hbm %s2391_s12, 2048 }
  0x72   : > { %p1681_p13 = scmp.ne.s32.totalorder %s2391_s12, %s1680_s28  ;;  %p1687_p5 = scmp.lt.u32.totalorder %s1680_s28, %s2391_s12 }
  0x74   : > { %p1683_p0 = pnand %p1681_p13, %p1992_p8 }
  0x76   : > { %p1684_p2 = pneg %p1683_p0 }
  0x78   : > { %p1689_p7 = pnand %p1687_p5, %p1684_p2 }
  0x7a   : > { %1692 = shalt.err (!%p1689_p7)
}
  0x7b   : > { %s1693_s25 = scalar_lea.vmem %s443_s10, 2048  ;;  %p1701_p11 = scmp.lt.s32.totalorder %s443_s10, %s443_s10 }
  0x7c   : > { %p1694_p9 = scmp.ne.s32.totalorder %s443_s10, %s1693_s25  ;;  %p1702_p12 = scmp.lt.s32.totalorder %s1693_s25, %s1693_s25 }
  0x7e   : > { %p1696_p4 = pnand %p1694_p9, %p1992_p8  ;;  %p1703_p1 = por %p1702_p12, %p1701_p11 }
  0x80   : > { %p1697_p10 = pneg %p1696_p4 }
  0x82   : > { %p1704_p3 = pnand %p1703_p1, %p1697_p10 }
  0x84   : > { %1707 = shalt.err (!%p1704_p3)
}
  0x85   : > { %1529 = dma.hbm_to_vmem [thread:$0]  (!%p1976_p6), %s2391_s12, 2048, %s443_s10, [#allocation12], %s1855_s26, %s1855_s26, %s1856_s13  }
  0x86   : > { %s1160_s23 = sadd.s32 4294967294, %s1850_s16   ;;  %s2091_s21 = sadd.s32 1, %s1850_s16  }
  0x87   : > { %s39_s9 = ssub.s32 %s1850_s16, %s2091_s21  ;;  %s42_s11 = sadd.s32 1, %s1846_s15 }
  0x88   : > { %p40_p1 = scmp.eq.s32.totalorder %s39_s9, 0  ;;  %p49_p3 = scmp.ne.s32.totalorder %s1846_s15, %s1842_s30 }
  0x89   : > { %p50_p8 = scmp.eq.s32.totalorder %s1850_s16, 0  ;;  %p55_p13 = scmp.ne.s32.totalorder %s1842_s30, %s1838_s29 }
  0x8a   : > { %s2102_s27 = scalar_select %p40_p1, %s1846_s15, %s42_s11  }
  0x8b   : > { %p2104_p0 = por %p50_p8, %p49_p3  ;;  %p2394_p2 = scmp.eq.s32.totalorder %s1960_s19, 0 }
  0x8c   : > { %2392 = sst [smem:[#allocation20_spill]] %s2102_s27  ;;  %p357_p5 = scmp.eq.s32.totalorder %s1960_s19, 1 }
  0x8d   : > { %p2110_p6 = por %p2394_p2, %p55_p13  ;;  %p363_p7 = scmp.eq.s32.totalorder %s1160_s23, 1 }
  0x8e   : > { %p1545_p9 = scmp.lt.s32.totalorder %s1850_s16, 2  ;;  %s459_s13 = sand.u32 1, %s1846_s15  }
  0x8f   : > { %s2395_s26 = scalar_select %p2110_p6, 1, 0 }
  0x90   : > { %p2117_p4 = por %p357_p5, %p49_p3  ;;  %p2121_p10 = por %p363_p7, %p55_p13 }
  0x91   : > { %s2125_s24 = sshll.u32 %s459_s13, 3  ;;  %s1168_s14 = sshll.u32 %s1850_s16, 7 }
  0x92   : > { %s2396_s10 = scalar_select %p2117_p4, 1, 0 }
  0x93   : > { %s2397_s17 = scalar_select %p2121_p10, 1, 0 }
  0x94   : > { %s2131_s18 = scalar_lea.hbm %s2355_s0, %s1168_s14  ;;  %s463_s7 = scalar_lea.vmem [#allocation2], %s2125_s24 }
  0x95   : > { %s470_s23 = sshll.u32 %s463_s7, 4  ;;  %p2138_p11 = pnand %p1545_p9, %p2104_p0  ;;  %s2134_s23 = int_to_ptr.vmem [resolvable:$true] %s470_s23 }
  0x96   : > { %s2145_s22 = scalar_lea.hbm %s2356_s1, %s1168_s14  ;;  %s477_s25 = sand.u32 1, %s1850_s16  }
  0x97   : > { %s460_s6 = scalar_lea.sflag [#allocation3], %s459_s13  ;;  %s1708_s8 = scalar_lea.hbm %s2131_s18, 128 }
  0x98   : > { %p1709_p12 = scmp.ne.s32.totalorder %s2131_s18, %s1708_s8  ;;  %p1710_p1 = pneg %p2138_p11 }
  0x99   : > { %s1713_s12 = scalar_lea.hbm %s2355_s0, 256  ;;  %p1714_p13 = scmp.lt.u32.totalorder %s2131_s18, %s2355_s0 }
  0x9a   : > { %p1711_p3 = pnand %p1710_p1, %p1709_p12  ;;  %p1715_p0 = scmp.lt.u32.totalorder %s1713_s12, %s1708_s8 }
  0x9b   : > { %p1717_p5 = scmp.lt.u32.totalorder %s1708_s8, %s2131_s18 }
  0x9c   : > { %p1712_p8 = pneg %p1711_p3  ;;  %p1716_p2 = por %p1715_p0, %p1714_p13 }
  0x9e   : > { %p1718_p7 = por %p1717_p5, %p1716_p2 }
  0xa0   : > { %p1719_p9 = pnand %p1718_p7, %p1712_p8 }
  0xa2   : > { %1722 = shalt.err (!%p1719_p9)
}
  0xa3   : > { %s1723_s13 = scalar_lea.vmem %s2134_s23, 128  ;;  %s1858_s14 = smov [#allocation2]  }
  0xa4   : > { %p1724_p12 = scmp.ne.s32.totalorder %s2134_s23, %s1723_s13  ;;  %s1728_s11 = sshll.u32 %s1858_s14, 4  ;;  %s1729_s11 = int_to_ptr.vmem [resolvable:$false] %s1728_s11 }
  0xa5   : > { %s1730_s27 = scalar_lea.vmem %s1729_s11, 256  ;;  %p1731_p4 = scmp.lt.s32.totalorder %s2134_s23, %s1729_s11 }
  0xa6   : > { %p1726_p3 = pnand %p1724_p12, %p1710_p1  ;;  %p1732_p13 = scmp.lt.s32.totalorder %s1730_s27, %s1723_s13 }
  0xa8   : > { %p1727_p10 = pneg %p1726_p3  ;;  %p1733_p0 = por %p1732_p13, %p1731_p4 }
  0xaa   : > { %p1734_p2 = pnand %p1733_p0, %p1727_p10 }
  0xac   : > { %1737 = shalt.err (!%p1734_p2)
}
  0xad   : > { %1533 = dma.hbm_to_vmem [thread:$0]  (!%p2138_p11), %s2131_s18, 128, %s2134_s23, %s460_s6  }
  0xae   : > { %s481_s8 = scalar_lea.vmem [#allocation5], %s2125_s24  ;;  %s478_s28 = scalar_lea.sflag [#allocation6], %s477_s25 }
  0xaf   : > { %s488_s12 = sshll.u32 %s481_s8, 4  ;;  %s1738_s7 = scalar_lea.hbm %s2145_s22, 128  ;;  %s489_s12 = int_to_ptr.vmem [resolvable:$true] %s488_s12 }
  0xb0   : > { %p1739_p4 = scmp.ne.s32.totalorder %s2145_s22, %s1738_s7  ;;  %s1743_s14 = scalar_lea.hbm %s2356_s1, 256 }
  0xb1   : > { %p1744_p5 = scmp.lt.u32.totalorder %s2145_s22, %s2356_s1  ;;  %p1745_p7 = scmp.lt.u32.totalorder %s1743_s14, %s1738_s7 }
  0xb2   : > { %p1741_p10 = pnand %p1739_p4, %p1710_p1  ;;  %p1747_p12 = scmp.lt.u32.totalorder %s1738_s7, %s2145_s22 }
  0xb3   : > { %p1746_p9 = por %p1745_p7, %p1744_p5 }
  0xb4   : > { %p1742_p8 = pneg %p1741_p10 }
  0xb5   : > { %p1748_p3 = por %p1747_p12, %p1746_p9 }
  0xb7   : > { %p1749_p13 = pnand %p1748_p3, %p1742_p8 }
  0xb9   : > { %1752 = shalt.err (!%p1749_p13)
}
  0xba   : > { %s1753_s6 = scalar_lea.vmem %s489_s12, 128  ;;  %s1859_s24 = smov [#allocation5]  }
  0xbb   : > { %p1754_p0 = scmp.ne.s32.totalorder %s489_s12, %s1753_s6  ;;  %s1758_s18 = sshll.u32 %s1859_s24, 4  ;;  %s1759_s18 = int_to_ptr.vmem [resolvable:$false] %s1758_s18 }
  0xbc   : > { %s1760_s23 = scalar_lea.vmem %s1759_s18, 256  ;;  %p1761_p10 = scmp.lt.s32.totalorder %s489_s12, %s1759_s18 }
  0xbd   : > { %p1756_p2 = pnand %p1754_p0, %p1710_p1  ;;  %p1762_p6 = scmp.lt.s32.totalorder %s1760_s23, %s1753_s6 }
  0xbf   : > { %p1757_p4 = pneg %p1756_p2  ;;  %p1763_p5 = por %p1762_p6, %p1761_p10 }
  0xc1   : > { %p1764_p7 = pnand %p1763_p5, %p1757_p4 }
  0xc3   : > { %1767 = shalt.err (!%p1764_p7)
}
  0xc4   : > { %1536 = dma.hbm_to_vmem [thread:$0]  (!%p2138_p11), %s2145_s22, 128, %s489_s12, %s478_s28  }
  0xc5   : > { %p2399_p8 = scmp.ne.s32.totalorder %s2385_s20, 0 }
  0xc6   : > { %s2198_s25 = sand.u32 (!%p2399_p8), 1, %s1842_s30   ;;  %p2400_p6 = scmp.ne.s32.totalorder (!%p2399_p8), %s2395_s26, 0 }
  0xc7   : > { %497 = sbr.rel (%p2399_p8) target bundleno = 1755 (0x6db), region = 76  ;;  %s2201_s8 = sshll.u32 (!%p2399_p8), %s2198_s25, 3 }
  0xc8   : > { %s500_s7 = scalar_lea.sflag (!%p2399_p8), [#allocation3], %s2198_s25  ;;  %s503_s2 = scalar_lea.vmem (!%p2399_p8), [#allocation2], %s2201_s8 }
  0xce   : > { %1813 = dma.done.wait (%p2400_p6), %s500_s7, 128  }
  0xcf   : > { %1815 = vsyncadd (%p2400_p6), %s500_s7, 4294967168  ;;  %s508_s20 = sand.u32 1, %s1960_s19   ;;  %s512_s22 = scalar_lea.vmem [#allocation5], %s2201_s8 }
  0xd0   : > { %s509_s9 = scalar_lea.sflag [#allocation6], %s508_s20 }
  0xd1   : > { %1817 = dma.done.wait (%p2400_p6), %s509_s9, 128  }
  0xd2   : > { %1819 = vsyncadd (%p2400_p6), %s509_s9, 4294967168  ;;  %p2401_p11 = scmp.eq.s32.totalorder %s1960_s19, 0 }
  0xd4   : > { %1821 = dma.done.wait (%p2401_p11), [#allocation6], 2048   ;;  %p2402_p1 = pmov %p2401_p11 }
  0xd6   : > { %1823 = vsyncadd (%p2402_p1), [#allocation6], 4294965248  ;;  %p2403_p9 = pmov %p2402_p1 }
  0xd7   : > { %p2404_p12 = pmov %p2402_p1 }
  0xd8   : > { %1825 = dma.done.wait (%p2403_p9), [#allocation9], 4096  }
  0xd9   : > { %1827 = vsyncadd (%p2404_p12), [#allocation9], 4294963200  ;;  %p2405_p3 = pmov %p2402_p1 }
  0xda   : > { %p2406_p13 = pmov %p2402_p1 }
  0xdb   : > { %1829 = dma.done.wait (%p2405_p3), [#allocation12], 2048  }
  0xdc   : > { %1831 = vsyncadd (%p2406_p13), [#allocation12], 4294965248  ;;  %v1860_v0 = vmov 0.0|0.0   ;;  %vm1861_vm0 = vmmov 0   ;;  %v1862_v1 = vmov 0.0   ;;  %v579_v2 = vld [vmem:[#allocation7] sm:$0xff]  ;;  %v679_v41 = vlaneseq }
  0xdd   : > { %1399 = vmatprep.subr.bf16.mxu0 %v1860_v0  ;;  %1291 = vmatprep.mubr.msk.f32.mxu0 %vm1861_vm0, %v1862_v1  ;;  %v580_v3 = vld [vmem:[#allocation7 + $0x8] sm:$0xff]  ;;  %v581_v4 = vld [vmem:[#allocation7 + $0x10] sm:$0xff]  ;;  %v582_v6 = vld [vmem:[#allocation7 + $0x18] sm:$0xff]  ;;  %s2407_s24 = sld [smem:[#allocation23_spill]]  ;;  %s2408_s7 = sld [smem:[#allocation25_spill]] }
  0xde   : > { %1423 = vmatprep.subr.bf16.mxu1 %v1860_v0  ;;  %1326 = vmatprep.mubr.msk.f32.mxu1 %vm1861_vm0, %v1862_v1  ;;  %v1400_v5 = vpack.c.bf16 %v580_v3, %v579_v2  ;;  %v1403_v7 = vpack.c.bf16 %v582_v6, %v581_v4  ;;  %v583_v8 = vld [vmem:[#allocation7 + $0x20] sm:$0xff]  ;;  %v584_v9 = vld [vmem:[#allocation7 + $0x28] sm:$0xff]  ;;  %v585_v11 = vld [vmem:[#allocation7 + $0x30] sm:$0xff]  ;;  %v2251_v42 = vand.u32 127, %v679_v41  ;;  %s2409_s9 = sld [smem:[#allocation26_spill]]  ;;  %s2410_s12 = sld [smem:[#allocation27_spill]] }
  0xdf   : > { %v1406_v10 = vpack.c.bf16 %v584_v9, %v583_v8  ;;  %v586_v12 = vld [vmem:[#allocation7 + $0x38] sm:$0xff]  ;;  %v587_v14 = vld [vmem:[#allocation7 + $0x40] sm:$0xff]  ;;  %v588_v15 = vld [vmem:[#allocation7 + $0x48] sm:$0xff]  ;;  %s2411_s14 = sld [smem:[#allocation29_spill]]  ;;  %s1188_s11 = sshll.u32 %s1960_s19, 7 }
  0xe0   : > { %1401 = vmatpush3.bf16.msra.mxu0 %v1400_v5  ;;  %v1409_v13 = vpack.c.bf16 %v586_v12, %v585_v11  ;;  %v1412_v16 = vpack.c.bf16 %v588_v15, %v587_v14  ;;  %v589_v17 = vld [vmem:[#allocation7 + $0x50] sm:$0xff]  ;;  %v590_v18 = vld [vmem:[#allocation7 + $0x58] sm:$0xff]  ;;  %v591_v20 = vld [vmem:[#allocation7 + $0x60] sm:$0xff]  ;;  %vm681_vm1 = vcmp.lt.s32.totalorder %v2251_v42, 32  ;;  %s577_s27 = scalar_lea.vmem [#allocation13], %s2201_s8  ;;  %s2412_s23 = sld [smem:[#allocation30_spill]] }
  0xe1   : > { %1402 = vmatprep.subr.bf16.mxu0 %v1860_v0  ;;  %v1415_v19 = vpack.c.bf16 %v590_v18, %v589_v17  ;;  %v592_v21 = vld [vmem:[#allocation7 + $0x68] sm:$0xff]  ;;  %v593_v23 = vld [vmem:[#allocation7 + $0x70] sm:$0xff]  ;;  %v594_v24 = vld [vmem:[#allocation7 + $0x78] sm:$0xff]  ;;  %s1029_s6 = sshll.u32 %s577_s27, 4  ;;  %p2413_p2 = scmp.ne.s32.totalorder %s2396_s10, 0  ;;  %s2313_s6 = int_to_ptr.vmem [resolvable:$true] %s1029_s6 }
  0xe2   : > { %v1418_v22 = vpack.c.bf16 %v592_v21, %v591_v20  ;;  %v1421_v25 = vpack.c.bf16 %v594_v24, %v593_v23  ;;  %v578_v26 = vld [vmem:[%s512_s22] sm:$0xff]  ;;  %v1179_v27 = vld [vmem:[%s2358_s3] ss:$0 sm:$0xff]  ;;  %v705_v33 = vld [vmem:[#allocation8 + $0x8] sm:$0xff]  ;;  %s1768_s20 = scalar_lea.vmem %s2313_s6, 128  ;;  %s1863_s19 = smov [#allocation13]  }
  0xe3   : > { %v704_v32 = vld [vmem:[#allocation8] sm:$0xff]  ;;  %v706_v34 = vld [vmem:[#allocation8 + $0x10] sm:$0xff]  ;;  %v707_v36 = vld [vmem:[#allocation8 + $0x18] sm:$0xff]  ;;  %p1769_p0 = scmp.ne.s32.totalorder %s2313_s6, %s1768_s20  ;;  %s1772_s8 = sshll.u32 %s1863_s19, 4  ;;  %s1773_s8 = int_to_ptr.vmem [resolvable:$false] %s1772_s8 }
  0xe4   : > { %1404 = vmatpush3.bf16.msra.mxu0 %v1403_v7  ;;  %v1424_v35 = vpack.c.bf16 %v705_v33, %v704_v32  ;;  %v1427_v37 = vpack.c.bf16 %v707_v36, %v706_v34  ;;  %v708_v38 = vld [vmem:[#allocation8 + $0x20] sm:$0xff]  ;;  %v709_v39 = vld [vmem:[#allocation8 + $0x28] sm:$0xff]  ;;  %v710_v48 = vld [vmem:[#allocation8 + $0x30] sm:$0xff]  ;;  %p1775_p5 = scmp.lt.s32.totalorder %s2313_s6, %s1773_s8 }
  0xe5   : > { %1405 = vmatprep.subr.bf16.mxu0 %v1860_v0  ;;  %v1430_v40 = vpack.c.bf16 %v709_v39, %v708_v38  ;;  %v711_v49 = vld [vmem:[#allocation8 + $0x38] sm:$0xff]  ;;  %v712_v51 = vld [vmem:[#allocation8 + $0x40] sm:$0xff]  ;;  %v713_v52 = vld [vmem:[#allocation8 + $0x48] sm:$0xff]  ;;  %p1770_p4 = pnand %p1769_p0, %p2413_p2 }
  0xe6   : > { %1425 = vmatpush3.bf16.msra.mxu1 %v1424_v35  ;;  %v1433_v50 = vpack.c.bf16 %v711_v49, %v710_v48  ;;  %v1436_v53 = vpack.c.bf16 %v713_v52, %v712_v51  ;;  %v714_v54 = vld [vmem:[#allocation8 + $0x50] sm:$0xff]  ;;  %v715_v55 = vld [vmem:[#allocation8 + $0x58] sm:$0xff]  ;;  %v716_v57 = vld [vmem:[#allocation8 + $0x60] sm:$0xff] }
  0xe7   : > { %1426 = vmatprep.subr.bf16.mxu1 %v1860_v0  ;;  %v1439_v56 = vpack.c.bf16 %v715_v55, %v714_v54  ;;  %v717_v58 = vld [vmem:[#allocation8 + $0x68] sm:$0xff]  ;;  %v718_v60 = vld [vmem:[#allocation8 + $0x70] sm:$0xff]  ;;  %v719_v61 = vld [vmem:[#allocation8 + $0x78] sm:$0xff]  ;;  %p1771_p10 = pneg %p1770_p4 }
  0xe8   : > { %1407 = vmatpush3.bf16.msra.mxu0 %v1406_v10  ;;  %v1442_v59 = vpack.c.bf16 %v717_v58, %v716_v57  ;;  %v1445_v62 = vpack.c.bf16 %v719_v61, %v718_v60  ;;  %v799_v63 = vld [vmem:[#allocation10] sm:$0xff]  ;;  %v800_v2 = vld [vmem:[#allocation10 + $0x8] sm:$0xff]  ;;  %v801_v3 = vld [vmem:[#allocation10 + $0x10] sm:$0xff] }
  0xe9   : > { %1408 = vmatprep.subr.bf16.mxu0 %v1860_v0  ;;  %v1448_v4 = vpack.c.bf16 %v800_v2, %v799_v63  ;;  %v802_v5 = vld [vmem:[#allocation10 + $0x18] sm:$0xff]  ;;  %v803_v7 = vld [vmem:[#allocation10 + $0x20] sm:$0xff]  ;;  %v804_v8 = vld [vmem:[#allocation10 + $0x28] sm:$0xff] }
  0xea   : > { %1428 = vmatpush3.bf16.msra.mxu1 %v1427_v37  ;;  %v1451_v6 = vpack.c.bf16 %v802_v5, %v801_v3  ;;  %v1454_v9 = vpack.c.bf16 %v804_v8, %v803_v7  ;;  %v805_v10 = vld [vmem:[#allocation10 + $0x30] sm:$0xff]  ;;  %v806_v11 = vld [vmem:[#allocation10 + $0x38] sm:$0xff]  ;;  %v808_v14 = vld [vmem:[#allocation10 + $0x48] sm:$0xff] }
  0xeb   : > { %1429 = vmatprep.subr.bf16.mxu1 %v1860_v0  ;;  %v1457_v12 = vpack.c.bf16 %v806_v11, %v805_v10  ;;  %v810_v17 = vld [vmem:[#allocation10 + $0x58] sm:$0xff]  ;;  %v812_v20 = vld [vmem:[#allocation10 + $0x68] sm:$0xff]  ;;  %v1182_v34 = vld [vmem:[%s2407_s24] ss:$0 sm:$0xff] }
  0xec   : > { %1410 = vmatpush3.bf16.msra.mxu0 %v1409_v13  ;;  %v807_v13 = vld [vmem:[#allocation10 + $0x40] sm:$0xff]  ;;  %v814_v32 = vld [vmem:[#allocation10 + $0x78] sm:$0xff]  ;;  %v926_v52 = vld [vmem:[#allocation11 + $0x28] sm:$0xff] }
  0xed   : > { %1411 = vmatprep.subr.bf16.mxu0 %v1860_v0  ;;  %v1460_v15 = vpack.c.bf16 %v808_v14, %v807_v13  ;;  %v797_v36 = vld [vmem:[%s503_s2] sm:$0xff]  ;;  %v924_v49 = vld [vmem:[#allocation11 + $0x18] sm:$0xff]  ;;  %v931_v3 = vld [vmem:[#allocation11 + $0x50] sm:$0xff]  ;;  %s1016_s2 = scalar_lea.sflag [#allocation4], %s2198_s25 }
  0xee   : > { %1431 = vmatpush3.bf16.msra.mxu1 %v1430_v40  ;;  %v1183_v40 = vld [vmem:[%s2408_s7] ss:$0 sm:$0xff]  ;;  %v928_v60 = vld [vmem:[#allocation11 + $0x38] sm:$0xff]  ;;  %v930_v63 = vld [vmem:[#allocation11 + $0x48] sm:$0xff]  ;;  %s2311_s7 = scalar_lea.hbm %s2412_s23, %s1188_s11 }
  0xef   : > { %1432 = vmatprep.subr.bf16.mxu1 %v1860_v0  ;;  %v925_v51 = vld [vmem:[#allocation11 + $0x20] sm:$0xff]  ;;  %v934_v42 = vld [vmem:[#allocation11 + $0x68] sm:$0xff]  ;;  %v935_v8 = vld [vmem:[#allocation11 + $0x70] sm:$0xff] }
  0xf0   : > { %1413 = vmatpush3.bf16.msra.mxu0 %v1412_v16  ;;  %v809_v16 = vld [vmem:[#allocation10 + $0x50] sm:$0xff]  ;;  %v1184_v14 = vld [vmem:[%s2409_s9] ss:$0 sm:$0xff]  ;;  %s1774_s9 = scalar_lea.vmem %s1773_s8, 256 }
  0xf1   : > { %1414 = vmatprep.subr.bf16.mxu0 %v1860_v0  ;;  %v1463_v18 = vpack.c.bf16 %v810_v17, %v809_v16  ;;  %v1185_v17 = vld [vmem:[%s2410_s12] ss:$0 sm:$0xff]  ;;  %p1776_p7 = scmp.lt.s32.totalorder %s1774_s9, %s1768_s20 }
  0xf2   : > { %1434 = vmatpush3.bf16.msra.mxu1 %v1433_v50 }
  0xf3   : > { %1435 = vmatprep.subr.bf16.mxu1 %v1860_v0  ;;  %p1777_p8 = por %p1776_p7, %p1775_p5 }
  0xf4   : > { %1416 = vmatpush3.bf16.msra.mxu0 %v1415_v19  ;;  %v811_v19 = vld [vmem:[#allocation10 + $0x60] sm:$0xff] }
  0xf5   : > { %1417 = vmatprep.subr.bf16.mxu0 %v1860_v0  ;;  %v1466_v21 = vpack.c.bf16 %v812_v20, %v811_v19  ;;  %p1778_p6 = pnand %p1777_p8, %p1771_p10 }
  0xf6   : > { %1437 = vmatpush3.bf16.msra.mxu1 %v1436_v53  ;;  %v1478_v53 = vpack.c.bf16 %v926_v52, %v925_v51 }
  0xf7   : > { %1438 = vmatprep.subr.bf16.mxu1 %v1860_v0 }
  0xf8   : > { %1419 = vmatpush3.bf16.msra.mxu0 %v1418_v22 }
  0xf9   : > { %1420 = vmatprep.subr.bf16.mxu0 %v1860_v0 }
  0xfa   : > { %1440 = vmatpush3.bf16.msra.mxu1 %v1439_v56 }
  0xfb   : > { %1441 = vmatprep.subr.bf16.mxu1 %v1860_v0 }
  0xfc   : > { %1422 = vmatpush3.bf16.msra.mxu0 %v1421_v25  ;;  %v1180_v25 = vld [vmem:[%s2359_s4] ss:$0 sm:$0xff] }
  0xfd   : > { %1447 = vmatprep.subr.bf16.mxu0 %v1860_v0 }
  0xfe   : > { %1443 = vmatpush3.bf16.msra.mxu1 %v1442_v59  ;;  %v927_v59 = vld [vmem:[#allocation11 + $0x30] sm:$0xff] }
  0xff   : > { %1292 = vmatmul.mubr.f32.vlgmr.msra.gmra.mrb[0].mxu0 %v578_v26  ;;  %1444 = vmatprep.subr.bf16.mxu1 %v1860_v0  ;;  %v1481_v61 = vpack.c.bf16 %v928_v60, %v927_v59 }
 0x100   : > { %1361 = vmatprep.mubr.msk.f32.mxu0 %vm1861_vm0, %v1862_v1  ;;  %1449 = vmatpush3.bf16.msra.mxu0 %v1448_v4  ;;  %v932_v4 = vld [vmem:[#allocation11 + $0x58] sm:$0xff] }
 0x101   : > { %1450 = vmatprep.subr.bf16.mxu0 %v1860_v0  ;;  %v1487_v5 = vpack.c.bf16 %v932_v4, %v931_v3 }
 0x102   : > { %1446 = vmatpush3.bf16.msra.mxu1 %v1445_v62  ;;  %v929_v62 = vld [vmem:[#allocation11 + $0x40] sm:$0xff] }
 0x103   : > { %1471 = vmatprep.subr.bf16.mxu1 %v1860_v0  ;;  %v1484_v2 = vpack.c.bf16 %v930_v63, %v929_v62 }
 0x104   : > { %1452 = vmatpush3.bf16.msra.mxu0 %v1451_v6  ;;  %v933_v6 = vld [vmem:[#allocation11 + $0x60] sm:$0xff] }
 0x105   : > { %1453 = vmatprep.subr.bf16.mxu0 %v1860_v0  ;;  %v1490_v7 = vpack.c.bf16 %v934_v42, %v933_v6 }
 0x108   : > { %1455 = vmatpush3.bf16.msra.mxu0 %v1454_v9  ;;  %v936_v9 = vld [vmem:[#allocation11 + $0x78] sm:$0xff] }
 0x109   : > { %1456 = vmatprep.subr.bf16.mxu0 %v1860_v0  ;;  %v1493_v10 = vpack.c.bf16 %v936_v9, %v935_v8 }
 0x10c   : > { %1458 = vmatpush3.bf16.msra.mxu0 %v1457_v12 }
 0x10d   : > { %1459 = vmatprep.subr.bf16.mxu0 %v1860_v0 }
 0x110   : > { %1461 = vmatpush3.bf16.msra.mxu0 %v1460_v15 }
 0x111   : > { %1462 = vmatprep.subr.bf16.mxu0 %v1860_v0 }
 0x114   : > { %1464 = vmatpush3.bf16.msra.mxu0 %v1463_v18 }
 0x115   : > { %1465 = vmatprep.subr.bf16.mxu0 %v1860_v0 }
 0x118   : > { %1467 = vmatpush3.bf16.msra.mxu0 %v1466_v21 }
 0x119   : > { %1468 = vmatprep.subr.bf16.mxu0 %v1860_v0 }
 0x1d2   : > { %v668_v28 = vpop.f32.mrb[0].mxu0 }
 0x1d3   : > { %v669_v29 = vadd.f32 %v1179_v27, %v668_v28  ;;  %v1293_v30 = vpop.f32.mrb[1].mxu0  ;;  %v1181_v28 = vld [vmem:[%s2360_s5] ss:$0 sm:$0xff] }
 0x1d5   : > { %v672_v31 = vmax.f32 %v669_v29, 0.0 }
 0x1d7   : > { %675 = vadd.xlane.f32.xlu0 %v672_v31 }
 0x264   : > { %v676_v43 = vpop.xlane.xlu0 %675 }
 0x265   : > { %v677_v44 = vmul.f32 0.03125, %v676_v43 }
 0x267   : > { %v2254_v45 = vsub.f32 %v672_v31, %v677_v44  ;;  %v813_v31 = vld [vmem:[#allocation10 + $0x70] sm:$0xff] }
 0x268   : > { %v1469_v33 = vpack.c.bf16 %v814_v32, %v813_v31 }
 0x269   : > { %v682_v46 = vsel %vm681_vm1, %v2254_v45, 0.0 }
 0x26a   : > { %v683_v47 = vmul.f32 %v682_v46, %v682_v46  ;;  %1470 = vmatpush3.bf16.msra.mxu0 %v1469_v33  ;;  %v922_v46 = vld [vmem:[#allocation11 + $0x8] sm:$0xff] }
 0x26c   : > { %684 = vadd.xlane.f32.xlu0 %v683_v47  ;;  %v923_v47 = vld [vmem:[#allocation11 + $0x10] sm:$0xff] }
 0x26d   : > { %v1475_v50 = vpack.c.bf16 %v924_v49, %v923_v47 }
 0x2f9   : > { %v685_v22 = vpop.xlane.xlu0 %684 }
 0x2fa   : > { %v686_v23 = vmul.f32 0.03125, %v685_v22 }
 0x2fc   : > { %v687_v24 = vadd.f32 1e-12, %v686_v23 }
 0x2fe   : > { %1592 = vrsqrt.f32 %v687_v24 }
 0x308   : > { %v1593_v26 = vpop.eup %1592 }
 0x309   : > { %v695_v27 = vmul.f32 %v1593_v26, %v1180_v25 }
 0x30b   : > { %v696_v29 = vmul.f32 %v695_v27, %v2254_v45  ;;  %v921_v45 = vld [vmem:[#allocation11] sm:$0xff] }
 0x30c   : > { %v1472_v48 = vpack.c.bf16 %v922_v46, %v921_v45 }
 0x30d   : > { %v703_v30 = vadd.f32 %v1181_v28, %v696_v29 }
 0x30f   : > { %1327 = vmatmul.mubr.f32.vlgmr.msra.gmra.mrb[0].mxu1 %v703_v30 }
 0x310   : > { %1396 = vmatprep.mubr.msk.f32.mxu1 %vm1861_vm0, %v1862_v1  ;;  %1473 = vmatpush3.bf16.msra.mxu1 %v1472_v48 }
 0x311   : > { %1474 = vmatprep.subr.bf16.mxu1 %v1860_v0 }
 0x314   : > { %1476 = vmatpush3.bf16.msra.mxu1 %v1475_v50 }
 0x315   : > { %1477 = vmatprep.subr.bf16.mxu1 %v1860_v0 }
 0x318   : > { %1479 = vmatpush3.bf16.msra.mxu1 %v1478_v53 }
 0x319   : > { %1480 = vmatprep.subr.bf16.mxu1 %v1860_v0 }
 0x31c   : > { %1482 = vmatpush3.bf16.msra.mxu1 %v1481_v61 }
 0x31d   : > { %1483 = vmatprep.subr.bf16.mxu1 %v1860_v0 }
 0x320   : > { %1485 = vmatpush3.bf16.msra.mxu1 %v1484_v2 }
 0x321   : > { %1486 = vmatprep.subr.bf16.mxu1 %v1860_v0 }
 0x324   : > { %1488 = vmatpush3.bf16.msra.mxu1 %v1487_v5 }
 0x325   : > { %1489 = vmatprep.subr.bf16.mxu1 %v1860_v0 }
 0x328   : > { %1491 = vmatpush3.bf16.msra.mxu1 %v1490_v7 }
 0x329   : > { %1492 = vmatprep.subr.bf16.mxu1 %v1860_v0  ;;  %v1186_v0 = vld [vmem:[%s2411_s14] ss:$0 sm:$0xff] }
 0x32c   : > { %1494 = vmatpush3.bf16.msra.mxu1 %v1493_v10 }
 0x3e2   : > { %v793_v35 = vpop.f32.mrb[0].mxu1 }
 0x3e3   : > { %v794_v37 = vadd.f32 %v1182_v34, %v793_v35  ;;  %v1328_v38 = vpop.f32.mrb[1].mxu1 }
 0x3e5   : > { %v798_v39 = vadd.f32 %v797_v36, %v794_v37 }
 0x3e7   : > { %1362 = vmatmul.mubr.f32.vlgmr.msra.gmra.mrb[2].mxu0 %v798_v39 }
 0x4ba   : > { %v888_v1 = vpop.f32.mrb[2].mxu0 }
 0x4bb   : > { %v889_v41 = vadd.f32 %v1183_v40, %v888_v1  ;;  %v1363_v43 = vpop.f32.mrb[3].mxu0 }
 0x4bd   : > { %v892_v44 = vmax.f32 %v889_v41, 0.0 }
 0x4bf   : > { %895 = vadd.xlane.f32.xlu1 %v892_v44 }
 0x54c   : > { %v896_v54 = vpop.xlane.xlu1 %895 }
 0x54d   : > { %v897_v55 = vmul.f32 0.03125, %v896_v54 }
 0x54f   : > { %v898_v56 = vsub.f32 %v892_v44, %v897_v55 }
 0x551   : > { %v899_v57 = vsel %vm681_vm1, %v898_v56, 0.0 }
 0x552   : > { %v900_v58 = vmul.f32 %v899_v57, %v899_v57 }
 0x554   : > { %901 = vadd.xlane.f32.xlu1 %v900_v58 }
 0x5e1   : > { %v902_v11 = vpop.xlane.xlu1 %901 }
 0x5e2   : > { %v903_v12 = vmul.f32 0.03125, %v902_v11 }
 0x5e4   : > { %v904_v13 = vadd.f32 1e-12, %v903_v12 }
 0x5e6   : > { %1594 = vrsqrt.f32 %v904_v13 }
 0x5f0   : > { %v1595_v15 = vpop.eup %1594 }
 0x5f1   : > { %v912_v16 = vmul.f32 %v1595_v15, %v1184_v14 }
 0x5f3   : > { %v913_v18 = vmul.f32 %v912_v16, %v898_v56 }
 0x5f5   : > { %v920_v19 = vadd.f32 %v1185_v17, %v913_v18 }
 0x5f7   : > { %1397 = vmatmul.mubr.f32.vlgmr.msra.gmra.mrb[2].mxu1 %v920_v19 }
 0x6ca   : > { %v1010_v20 = vpop.f32.mrb[2].mxu1 }
 0x6cb   : > { %v1011_v21 = vadd.f32 %v1186_v0, %v1010_v20  ;;  %v1398_v22 = vpop.f32.mrb[3].mxu1 }
 0x6cd   : > { %1014 = vst [vmem:[%s577_s27] sm:$0xff] %v1011_v21 }
 0x6ce   : > { %1781 = shalt.err (!%p1778_p6)
}
 0x6cf   : > { %s1782_s25 = scalar_lea.hbm %s2311_s7, 128  ;;  %s1786_s12 = scalar_lea.hbm %s2412_s23, 256 }
 0x6d0   : > { %p1783_p11 = scmp.ne.s32.totalorder %s2311_s7, %s1782_s25  ;;  %p1787_p12 = scmp.lt.u32.totalorder %s2311_s7, %s2412_s23 }
 0x6d1   : > { %p1788_p3 = scmp.lt.u32.totalorder %s1786_s12, %s1782_s25  ;;  %p1790_p0 = scmp.lt.u32.totalorder %s1782_s25, %s2311_s7 }
 0x6d2   : > { %p1784_p1 = pnand %p1783_p11, %p2413_p2 }
 0x6d3   : > { %p1789_p13 = por %p1788_p3, %p1787_p12 }
 0x6d4   : > { %p1785_p9 = pneg %p1784_p1 }
 0x6d5   : > { %p1791_p4 = por %p1790_p0, %p1789_p13 }
 0x6d7   : > { %p1792_p10 = pnand %p1791_p4, %p1785_p9 }
 0x6d9   : > { %1795 = shalt.err (!%p1792_p10)
}
 0x6da   : > { %1515 = dma.vmem_to_hbm [thread:$0]  (%p2413_p2), %s2313_s6, 128, %s2311_s7, %s1016_s2  }
 0x6db PF: > { %s1041_s14 = sand.u32 1, %s1838_s29   ;;  %p2414_p5 = scmp.ne.s32.totalorder %s2397_s17, 0 }
 0x6dc   : > { %p2415_p7 = scmp.ge.s32.totalorder %s1850_s16, 2  ;;  %s1042_s11 = scalar_lea.sflag [#allocation4], %s1041_s14 }
 0x6de   : > { %p1538_p8 = pnand %p2415_p7, %p2414_p5 }
 0x6e0   : > { %1833 = dma.done.wait (!%p1538_p8), %s1042_s11, 128  }
 0x6e1   : > { %1835 = vsyncadd (!%p1538_p8), %s1042_s11, 4294967168  ;;  %s2416_s27 = sld [smem:[#allocation20_spill]]  ;;  %p32_p6 = scmp.ge.s32.totalorder %s2091_s21, 4  }
 0x6e2   : > { %s2417_s29 = smov %s1842_s30  ;;  %s2418_s30 = smov %s1846_s15 }
 0x6e3   : > { %s2420_s16 = smov %s2091_s21  ;;  %34 = sbr.rel (!%p32_p6) target bundleno = 20 (0x14), region = 150 }
 0x6e7   : > { %s2419_s15 = smov %s2416_s27 }
 0x6ea   :  { %1047 = vsyncpa [#allocation3], 1 }
 0x6eb   :  { %1049 = vsyncpa [#allocation3 + $0x1], 1 }
 0x6ec   :  { %1050 = vsyncpa [#allocation6], 1 }
 0x6ed   :  { %1052 = vsyncpa [#allocation6 + $0x1], 1 }
 0x6ee   :  { %1053 = vsyncpa [#allocation9], 1 }
 0x6ef   :  { %1054 = vsyncpa [#allocation12], 1 }
 0x6f0   :  { %1055 = vsyncpa [#allocation4], 1 }
 0x6f1   :  { %1057 = vsyncpa [#allocation4 + $0x1], 1 }

// kernel: tpu_custom_call.1
= control target key start
LH: loop header
LB: loop body
LE: loop exit
PB: predicated region body
PF: predicated region fallthrough
CT: control target
= control target key end

     0   :  { %s2355_s0 = inlined_call_operand.hbm [shape: f32[16,128], index: 0, kind: input, shape index: {}]   ;;  %s2356_s1 = inlined_call_operand.hbm [shape: f32[16,128], index: 1, kind: input, shape index: {}]   ;;  %s2357_s2 = inlined_call_operand.hbm [shape: f32[128,128], index: 2, kind: input, shape index: {}]   ;;  %s2358_s3 = inlined_call_operand.vmem [shape: f32[1,128], index: 3, kind: input, shape index: {}]   ;;  %s2359_s4 = inlined_call_operand.vmem [shape: f32[1,128], index: 4, kind: input, shape index: {}]   ;;  %s2360_s5 = inlined_call_operand.vmem [shape: f32[1,128], index: 5, kind: input, shape index: {}]   ;;  %s2361_s6 = inlined_call_operand.hbm [shape: f32[128,128], index: 6, kind: input, shape index: {}]   ;;  %s2362_s7 = inlined_call_operand.vmem [shape: f32[1,128], index: 7, kind: input, shape index: {}]   ;;  %s2363_s8 = inlined_call_operand.hbm [shape: f32[128,128], index: 8, kind: input, shape index: {}]   ;;  %s2364_s9 = inlined_call_operand.vmem [shape: f32[1,128], index: 9, kind: input, shape index: {}]   ;;  %s2365_s10 = inlined_call_operand.vmem [shape: f32[1,128], index: 10, kind: input, shape index: {}]   ;;  %s2366_s11 = inlined_call_operand.vmem [shape: f32[1,128], index: 11, kind: input, shape index: {}]   ;;  %s2367_s12 = inlined_call_operand.hbm [shape: f32[128,128], index: 12, kind: input, shape index: {}]   ;;  %s2368_s13 = inlined_call_operand.vmem [shape: f32[1,128], index: 13, kind: input, shape index: {}]   ;;  %s2369_s14 = inlined_call_operand.hbm [shape: f32[16,128], index: 14, kind: output, shape index: {}]  }
   0x1   :  { %2375 = sst [smem:[#allocation21_spill]] %s2357_s2 }
   0x2   :  { %2376 = sst [smem:[#allocation22_spill]] %s2361_s6 }
   0x3   :  { %2377 = sst [smem:[#allocation23_spill]] %s2362_s7 }
   0x4   :  { %2378 = sst [smem:[#allocation24_spill]] %s2363_s8 }
   0x5   :  { %2379 = sst [smem:[#allocation25_spill]] %s2364_s9 }
   0x6   :  { %2380 = sst [smem:[#allocation26_spill]] %s2365_s10 }
   0x7   :  { %2381 = sst [smem:[#allocation27_spill]] %s2366_s11 }
   0x8   :  { %2382 = sst [smem:[#allocation28_spill]] %s2367_s12 }
   0x9   :  { %2383 = sst [smem:[#allocation29_spill]] %s2368_s13 }
   0xa   :  { %2384 = sst [smem:[#allocation30_spill]] %s2369_s14 }
   0xb   :  { %19 = vsyncpa [#allocation3], 0 }
   0xc   :  { %21 = vsyncpa [#allocation3 + $0x1], 0 }
   0xd   :  { %22 = vsyncpa [#allocation6], 0 }
   0xe   :  { %24 = vsyncpa [#allocation6 + $0x1], 0 }
   0xf   :  { %25 = vsyncpa [#allocation9], 0 }
  0x10   :  { %26 = vsyncpa [#allocation12], 0 }
  0x11   :  { %27 = vsyncpa [#allocation4], 0 }
  0x12   :  { %29 = vsyncpa [#allocation4 + $0x1], 0  ;;  %s1939_s29 = smov 0   ;;  %s1941_s30 = smov 0  }
  0x13   :  { %s1943_s15 = smov 0   ;;  %s1945_s16 = smov 0  }
  0x14 LB: > { %s1852_s17 = smov [#allocation7]   ;;  %s1960_s19 = sadd.s32 4294967295, %s1850_s16   ;;  %s1850_s16 = sphi %s1945_s16, %s2420_s16   ;;  %s1846_s15 = sphi %s1943_s15, %s2419_s15   ;;  %s1842_s30 = sphi %s1941_s30, %s2418_s30   ;;  %s1838_s29 = sphi %s1939_s29, %s2417_s29  }
  0x15   : > { %s382_s18 = sshll.u32 %s1852_s17, 4  ;;  %p1161_p0 = scmp.ge.s32.totalorder %s1850_s16, 1  ;;  %s1965_s18 = int_to_ptr.vmem [resolvable:$true] %s382_s18 }
  0x16   : > { %p2371_p1 = scmp.eq.s32.totalorder %s1960_s19, 0  ;;  %p370_p2 = scmp.lt.s32.totalorder %s1850_s16, 3 }
  0x17   : > { %s1853_s21 = smov [#allocation8]   ;;  %s1854_s24 = smov [#allocation10]  }
  0x18   : > { %p1967_p3 = pnand %p1161_p0, %p370_p2  ;;  %s404_s22 = sshll.u32 %s1853_s21, 4  ;;  %s1980_s22 = int_to_ptr.vmem [resolvable:$true] %s404_s22 }
  0x19   : > { %s420_s25 = sshll.u32 %s1854_s24, 4  ;;  %s2387_s2 = sld [smem:[#allocation21_spill]]  ;;  %s1982_s25 = int_to_ptr.vmem [resolvable:$true] %s420_s25 }
  0x1a   : > { %s2385_s20 = scalar_select %p1967_p3, 1, 0 }
  0x1b   : > { %p1517_p5 = pneg %p1967_p3 }
  0x1d   : > { %p1976_p6 = pnand %p1517_p5, %p2371_p1 }
  0x1f   : > { %s1596_s28 = scalar_lea.hbm %s2387_s2, 2048  ;;  %p1992_p8 = pneg %p1976_p6 }
  0x20   : > { %p1597_p7 = scmp.ne.s32.totalorder %s2387_s2, %s1596_s28  ;;  %p1603_p11 = scmp.lt.u32.totalorder %s1596_s28, %s2387_s2 }
  0x22   : > { %p1599_p9 = pnand %p1992_p8, %p1597_p7 }
  0x24   : > { %p1600_p10 = pneg %p1599_p9 }
  0x26   : > { %p1605_p12 = pnand %p1603_p11, %p1600_p10 }
  0x28   : > { %1608 = shalt.err (!%p1605_p12)
}
  0x29   : > { %s1609_s14 = scalar_lea.vmem %s1965_s18, 2048  ;;  %p1617_p5 = scmp.lt.s32.totalorder %s1965_s18, %s1965_s18 }
  0x2a   : > { %p1610_p13 = scmp.ne.s32.totalorder %s1965_s18, %s1609_s14  ;;  %p1618_p4 = scmp.lt.s32.totalorder %s1609_s14, %s1609_s14 }
  0x2c   : > { %p1612_p0 = pnand %p1610_p13, %p1992_p8  ;;  %p1619_p7 = por %p1618_p4, %p1617_p5 }
  0x2e   : > { %p1613_p2 = pneg %p1612_p0 }
  0x30   : > { %p1620_p9 = pnand %p1619_p7, %p1613_p2 }
  0x32   : > { %1623 = shalt.err (!%p1620_p9)
}
  0x33   : > { %s1855_s26 = smov 128   ;;  %s1856_s13 = smov 8  }
  0x34   : > { %1520 = dma.hbm_to_vmem [thread:$0]  (!%p1976_p6), %s2387_s2, 2048, %s1965_s18, [#allocation6], %s1855_s26, %s1855_s26, %s1856_s13  }
  0x35   : > { %s2389_s6 = sld [smem:[#allocation22_spill]] }
  0x3b   : > { %s1624_s14 = scalar_lea.hbm %s2389_s6, 2048 }
  0x3c   : > { %p1625_p4 = scmp.ne.s32.totalorder %s2389_s6, %s1624_s14  ;;  %p1631_p12 = scmp.lt.u32.totalorder %s1624_s14, %s2389_s6 }
  0x3e   : > { %p1627_p10 = pnand %p1625_p4, %p1992_p8 }
  0x40   : > { %p1628_p11 = pneg %p1627_p10 }
  0x42   : > { %p1633_p13 = pnand %p1631_p12, %p1628_p11 }
  0x44   : > { %1636 = shalt.err (!%p1633_p13)
}
  0x45   : > { %s1637_s18 = scalar_lea.vmem %s1980_s22, 2048  ;;  %p1645_p7 = scmp.lt.s32.totalorder %s1980_s22, %s1980_s22 }
  0x46   : > { %p1638_p0 = scmp.ne.s32.totalorder %s1980_s22, %s1637_s18  ;;  %p1646_p9 = scmp.lt.s32.totalorder %s1637_s18, %s1637_s18 }
  0x48   : > { %p1640_p2 = pnand %p1638_p0, %p1992_p8  ;;  %p1647_p4 = por %p1646_p9, %p1645_p7 }
  0x4a   : > { %p1641_p5 = pneg %p1640_p2 }
  0x4c   : > { %p1648_p10 = pnand %p1647_p4, %p1641_p5 }
  0x4e   : > { %1651 = shalt.err (!%p1648_p10)
}
  0x4f   : > { %1523 = dma.hbm_to_vmem [thread:$0]  (!%p1976_p6), %s2389_s6, 2048, %s1980_s22, [#allocation9], %s1855_s26, %s1855_s26, %s1856_s13  }
  0x50   : > { %s2390_s8 = sld [smem:[#allocation24_spill]] }
  0x56   : > { %s1652_s27 = scalar_lea.hbm %s2390_s8, 2048 }
  0x57   : > { %p1653_p11 = scmp.ne.s32.totalorder %s2390_s8, %s1652_s27  ;;  %p1659_p0 = scmp.lt.u32.totalorder %s1652_s27, %s2390_s8 }
  0x59   : > { %p1655_p12 = pnand %p1653_p11, %p1992_p8 }
  0x5b   : > { %p1656_p13 = pneg %p1655_p12 }
  0x5d   : > { %p1661_p2 = pnand %p1659_p0, %p1656_p13 }
  0x5f   : > { %1664 = shalt.err (!%p1661_p2)
}
  0x60   : > { %s1665_s22 = scalar_lea.vmem %s1982_s25, 2048  ;;  %p1673_p4 = scmp.lt.s32.totalorder %s1982_s25, %s1982_s25 }
  0x61   : > { %p1666_p5 = scmp.ne.s32.totalorder %s1982_s25, %s1665_s22  ;;  %p1674_p10 = scmp.lt.s32.totalorder %s1665_s22, %s1665_s22 }
  0x63   : > { %p1668_p7 = pnand %p1666_p5, %p1992_p8  ;;  %p1675_p11 = por %p1674_p10, %p1673_p4 }
  0x65   : > { %p1669_p9 = pneg %p1668_p7 }
  0x67   : > { %p1676_p12 = pnand %p1675_p11, %p1669_p9 }
  0x69   : > { %1679 = shalt.err (!%p1676_p12)
}
  0x6a   : > { %1526 = dma.hbm_to_vmem [thread:$0]  (!%p1976_p6), %s2390_s8, 2048, %s1982_s25, [#allocation9], %s1855_s26, %s1855_s26, %s1856_s13  }
  0x6b   : > { %s1857_s9 = smov [#allocation11]   ;;  %s2391_s12 = sld [smem:[#allocation28_spill]] }
  0x6c   : > { %s442_s10 = sshll.u32 %s1857_s9, 4  ;;  %s443_s10 = int_to_ptr.vmem [resolvable:$true] %s442_s10 }
  0x71   : > { %s1680_s28 = scalar_lea.hbm %s2391_s12, 2048 }
  0x72   : > { %p1681_p13 = scmp.ne.s32.totalorder %s2391_s12, %s1680_s28  ;;  %p1687_p5 = scmp.lt.u32.totalorder %s1680_s28, %s2391_s12 }
  0x74   : > { %p1683_p0 = pnand %p1681_p13, %p1992_p8 }
  0x76   : > { %p1684_p2 = pneg %p1683_p0 }
  0x78   : > { %p1689_p7 = pnand %p1687_p5, %p1684_p2 }
  0x7a   : > { %1692 = shalt.err (!%p1689_p7)
}
  0x7b   : > { %s1693_s25 = scalar_lea.vmem %s443_s10, 2048  ;;  %p1701_p11 = scmp.lt.s32.totalorder %s443_s10, %s443_s10 }
  0x7c   : > { %p1694_p9 = scmp.ne.s32.totalorder %s443_s10, %s1693_s25  ;;  %p1702_p12 = scmp.lt.s32.totalorder %s1693_s25, %s1693_s25 }
  0x7e   : > { %p1696_p4 = pnand %p1694_p9, %p1992_p8  ;;  %p1703_p1 = por %p1702_p12, %p1701_p11 }
  0x80   : > { %p1697_p10 = pneg %p1696_p4 }
  0x82   : > { %p1704_p3 = pnand %p1703_p1, %p1697_p10 }
  0x84   : > { %1707 = shalt.err (!%p1704_p3)
}
  0x85   : > { %1529 = dma.hbm_to_vmem [thread:$0]  (!%p1976_p6), %s2391_s12, 2048, %s443_s10, [#allocation12], %s1855_s26, %s1855_s26, %s1856_s13  }
  0x86   : > { %s1160_s23 = sadd.s32 4294967294, %s1850_s16   ;;  %s2091_s21 = sadd.s32 1, %s1850_s16  }
  0x87   : > { %s39_s9 = ssub.s32 %s1850_s16, %s2091_s21  ;;  %s42_s11 = sadd.s32 1, %s1846_s15 }
  0x88   : > { %p40_p1 = scmp.eq.s32.totalorder %s39_s9, 0  ;;  %p49_p3 = scmp.ne.s32.totalorder %s1846_s15, %s1842_s30 }
  0x89   : > { %p50_p8 = scmp.eq.s32.totalorder %s1850_s16, 0  ;;  %p55_p13 = scmp.ne.s32.totalorder %s1842_s30, %s1838_s29 }
  0x8a   : > { %s2102_s27 = scalar_select %p40_p1, %s1846_s15, %s42_s11  }
  0x8b   : > { %p2104_p0 = por %p50_p8, %p49_p3  ;;  %p2394_p2 = scmp.eq.s32.totalorder %s1960_s19, 0 }
  0x8c   : > { %2392 = sst [smem:[#allocation20_spill]] %s2102_s27  ;;  %p357_p5 = scmp.eq.s32.totalorder %s1960_s19, 1 }
  0x8d   : > { %p2110_p6 = por %p2394_p2, %p55_p13  ;;  %p363_p7 = scmp.eq.s32.totalorder %s1160_s23, 1 }
  0x8e   : > { %p1545_p9 = scmp.lt.s32.totalorder %s1850_s16, 2  ;;  %s459_s13 = sand.u32 1, %s1846_s15  }
  0x8f   : > { %s2395_s26 = scalar_select %p2110_p6, 1, 0 }
  0x90   : > { %p2117_p4 = por %p357_p5, %p49_p3  ;;  %p2121_p10 = por %p363_p7, %p55_p13 }
  0x91   : > { %s2125_s24 = sshll.u32 %s459_s13, 3  ;;  %s1168_s14 = sshll.u32 %s1850_s16, 7 }
  0x92   : > { %s2396_s10 = scalar_select %p2117_p4, 1, 0 }
  0x93   : > { %s2397_s17 = scalar_select %p2121_p10, 1, 0 }
  0x94   : > { %s2131_s18 = scalar_lea.hbm %s2355_s0, %s1168_s14  ;;  %s463_s7 = scalar_lea.vmem [#allocation2], %s2125_s24 }
  0x95   : > { %s470_s23 = sshll.u32 %s463_s7, 4  ;;  %p2138_p11 = pnand %p1545_p9, %p2104_p0  ;;  %s2134_s23 = int_to_ptr.vmem [resolvable:$true] %s470_s23 }
  0x96   : > { %s2145_s22 = scalar_lea.hbm %s2356_s1, %s1168_s14  ;;  %s477_s25 = sand.u32 1, %s1850_s16  }
  0x97   : > { %s460_s6 = scalar_lea.sflag [#allocation3], %s459_s13  ;;  %s1708_s8 = scalar_lea.hbm %s2131_s18, 128 }
  0x98   : > { %p1709_p12 = scmp.ne.s32.totalorder %s2131_s18, %s1708_s8  ;;  %p1710_p1 = pneg %p2138_p11 }
  0x99   : > { %s1713_s12 = scalar_lea.hbm %s2355_s0, 256  ;;  %p1714_p13 = scmp.lt.u32.totalorder %s2131_s18, %s2355_s0 }
  0x9a   : > { %p1711_p3 = pnand %p1710_p1, %p1709_p12  ;;  %p1715_p0 = scmp.lt.u32.totalorder %s1713_s12, %s1708_s8 }
  0x9b   : > { %p1717_p5 = scmp.lt.u32.totalorder %s1708_s8, %s2131_s18 }
  0x9c   : > { %p1712_p8 = pneg %p1711_p3  ;;  %p1716_p2 = por %p1715_p0, %p1714_p13 }
  0x9e   : > { %p1718_p7 = por %p1717_p5, %p1716_p2 }
  0xa0   : > { %p1719_p9 = pnand %p1718_p7, %p1712_p8 }
  0xa2   : > { %1722 = shalt.err (!%p1719_p9)
}
  0xa3   : > { %s1723_s13 = scalar_lea.vmem %s2134_s23, 128  ;;  %s1858_s14 = smov [#allocation2]  }
  0xa4   : > { %p1724_p12 = scmp.ne.s32.totalorder %s2134_s23, %s1723_s13  ;;  %s1728_s11 = sshll.u32 %s1858_s14, 4  ;;  %s1729_s11 = int_to_ptr.vmem [resolvable:$false] %s1728_s11 }
  0xa5   : > { %s1730_s27 = scalar_lea.vmem %s1729_s11, 256  ;;  %p1731_p4 = scmp.lt.s32.totalorder %s2134_s23, %s1729_s11 }
  0xa6   : > { %p1726_p3 = pnand %p1724_p12, %p1710_p1  ;;  %p1732_p13 = scmp.lt.s32.totalorder %s1730_s27, %s1723_s13 }
  0xa8   : > { %p1727_p10 = pneg %p1726_p3  ;;  %p1733_p0 = por %p1732_p13, %p1731_p4 }
  0xaa   : > { %p1734_p2 = pnand %p1733_p0, %p1727_p10 }
  0xac   : > { %1737 = shalt.err (!%p1734_p2)
}
  0xad   : > { %1533 = dma.hbm_to_vmem [thread:$0]  (!%p2138_p11), %s2131_s18, 128, %s2134_s23, %s460_s6  }
  0xae   : > { %s481_s8 = scalar_lea.vmem [#allocation5], %s2125_s24  ;;  %s478_s28 = scalar_lea.sflag [#allocation6], %s477_s25 }
  0xaf   : > { %s488_s12 = sshll.u32 %s481_s8, 4  ;;  %s1738_s7 = scalar_lea.hbm %s2145_s22, 128  ;;  %s489_s12 = int_to_ptr.vmem [resolvable:$true] %s488_s12 }
  0xb0   : > { %p1739_p4 = scmp.ne.s32.totalorder %s2145_s22, %s1738_s7  ;;  %s1743_s14 = scalar_lea.hbm %s2356_s1, 256 }
  0xb1   : > { %p1744_p5 = scmp.lt.u32.totalorder %s2145_s22, %s2356_s1  ;;  %p1745_p7 = scmp.lt.u32.totalorder %s1743_s14, %s1738_s7 }
  0xb2   : > { %p1741_p10 = pnand %p1739_p4, %p1710_p1  ;;  %p1747_p12 = scmp.lt.u32.totalorder %s1738_s7, %s2145_s22 }
  0xb3   : > { %p1746_p9 = por %p1745_p7, %p1744_p5 }
  0xb4   : > { %p1742_p8 = pneg %p1741_p10 }
  0xb5   : > { %p1748_p3 = por %p1747_p12, %p1746_p9 }
  0xb7   : > { %p1749_p13 = pnand %p1748_p3, %p1742_p8 }
  0xb9   : > { %1752 = shalt.err (!%p1749_p13)
}
  0xba   : > { %s1753_s6 = scalar_lea.vmem %s489_s12, 128  ;;  %s1859_s24 = smov [#allocation5]  }
  0xbb   : > { %p1754_p0 = scmp.ne.s32.totalorder %s489_s12, %s1753_s6  ;;  %s1758_s18 = sshll.u32 %s1859_s24, 4  ;;  %s1759_s18 = int_to_ptr.vmem [resolvable:$false] %s1758_s18 }
  0xbc   : > { %s1760_s23 = scalar_lea.vmem %s1759_s18, 256  ;;  %p1761_p10 = scmp.lt.s32.totalorder %s489_s12, %s1759_s18 }
  0xbd   : > { %p1756_p2 = pnand %p1754_p0, %p1710_p1  ;;  %p1762_p6 = scmp.lt.s32.totalorder %s1760_s23, %s1753_s6 }
  0xbf   : > { %p1757_p4 = pneg %p1756_p2  ;;  %p1763_p5 = por %p1762_p6, %p1761_p10 }
  0xc1   : > { %p1764_p7 = pnand %p1763_p5, %p1757_p4 }
  0xc3   : > { %1767 = shalt.err (!%p1764_p7)
}
  0xc4   : > { %1536 = dma.hbm_to_vmem [thread:$0]  (!%p2138_p11), %s2145_s22, 128, %s489_s12, %s478_s28  }
  0xc5   : > { %p2399_p8 = scmp.ne.s32.totalorder %s2385_s20, 0 }
  0xc6   : > { %s2198_s25 = sand.u32 (!%p2399_p8), 1, %s1842_s30   ;;  %p2400_p6 = scmp.ne.s32.totalorder (!%p2399_p8), %s2395_s26, 0 }
  0xc7   : > { %497 = sbr.rel (%p2399_p8) target bundleno = 1755 (0x6db), region = 76  ;;  %s2201_s8 = sshll.u32 (!%p2399_p8), %s2198_s25, 3 }
  0xc8   : > { %s500_s7 = scalar_lea.sflag (!%p2399_p8), [#allocation3], %s2198_s25  ;;  %s503_s2 = scalar_lea.vmem (!%p2399_p8), [#allocation2], %s2201_s8 }
  0xce   : > { %1813 = dma.done.wait (%p2400_p6), %s500_s7, 128  }
  0xcf   : > { %1815 = vsyncadd (%p2400_p6), %s500_s7, 4294967168  ;;  %s508_s20 = sand.u32 1, %s1960_s19   ;;  %s512_s22 = scalar_lea.vmem [#allocation5], %s2201_s8 }
  0xd0   : > { %s509_s9 = scalar_lea.sflag [#allocation6], %s508_s20 }
  0xd1   : > { %1817 = dma.done.wait (%p2400_p6), %s509_s9, 128  }
  0xd2   : > { %1819 = vsyncadd (%p2400_p6), %s509_s9, 4294967168  ;;  %p2401_p11 = scmp.eq.s32.totalorder %s1960_s19, 0 }
  0xd4   : > { %1821 = dma.done.wait (%p2401_p11), [#allocation6], 2048   ;;  %p2402_p1 = pmov %p2401_p11 }
  0xd6   : > { %1823 = vsyncadd (%p2402_p1), [#allocation6], 4294965248  ;;  %p2403_p9 = pmov %p2402_p1 }
  0xd7   : > { %p2404_p12 = pmov %p2402_p1 }
  0xd8   : > { %1825 = dma.done.wait (%p2403_p9), [#allocation9], 4096  }
  0xd9   : > { %1827 = vsyncadd (%p2404_p12), [#allocation9], 4294963200  ;;  %p2405_p3 = pmov %p2402_p1 }
  0xda   : > { %p2406_p13 = pmov %p2402_p1 }
  0xdb   : > { %1829 = dma.done.wait (%p2405_p3), [#allocation12], 2048  }
  0xdc   : > { %1831 = vsyncadd (%p2406_p13), [#allocation12], 4294965248  ;;  %v1860_v0 = vmov 0.0|0.0   ;;  %vm1861_vm0 = vmmov 0   ;;  %v1862_v1 = vmov 0.0   ;;  %v579_v2 = vld [vmem:[#allocation7] sm:$0xff]  ;;  %v679_v41 = vlaneseq }
  0xdd   : > { %1399 = vmatprep.subr.bf16.mxu0 %v1860_v0  ;;  %1291 = vmatprep.mubr.msk.f32.mxu0 %vm1861_vm0, %v1862_v1  ;;  %v580_v3 = vld [vmem:[#allocation7 + $0x8] sm:$0xff]  ;;  %v581_v4 = vld [vmem:[#allocation7 + $0x10] sm:$0xff]  ;;  %v582_v6 = vld [vmem:[#allocation7 + $0x18] sm:$0xff]  ;;  %s2407_s24 = sld [smem:[#allocation23_spill]]  ;;  %s2408_s7 = sld [smem:[#allocation25_spill]] }
  0xde   : > { %1423 = vmatprep.subr.bf16.mxu1 %v1860_v0  ;;  %1326 = vmatprep.mubr.msk.f32.mxu1 %vm1861_vm0, %v1862_v1  ;;  %v1400_v5 = vpack.c.bf16 %v580_v3, %v579_v2  ;;  %v1403_v7 = vpack.c.bf16 %v582_v6, %v581_v4  ;;  %v583_v8 = vld [vmem:[#allocation7 + $0x20] sm:$0xff]  ;;  %v584_v9 = vld [vmem:[#allocation7 + $0x28] sm:$0xff]  ;;  %v585_v11 = vld [vmem:[#allocation7 + $0x30] sm:$0xff]  ;;  %v2251_v42 = vand.u32 127, %v679_v41  ;;  %s2409_s9 = sld [smem:[#allocation26_spill]]  ;;  %s2410_s12 = sld [smem:[#allocation27_spill]] }
  0xdf   : > { %v1406_v10 = vpack.c.bf16 %v584_v9, %v583_v8  ;;  %v586_v12 = vld [vmem:[#allocation7 + $0x38] sm:$0xff]  ;;  %v587_v14 = vld [vmem:[#allocation7 + $0x40] sm:$0xff]  ;;  %v588_v15 = vld [vmem:[#allocation7 + $0x48] sm:$0xff]  ;;  %s2411_s14 = sld [smem:[#allocation29_spill]]  ;;  %s1188_s11 = sshll.u32 %s1960_s19, 7 }
  0xe0   : > { %1401 = vmatpush3.bf16.msra.mxu0 %v1400_v5  ;;  %v1409_v13 = vpack.c.bf16 %v586_v12, %v585_v11  ;;  %v1412_v16 = vpack.c.bf16 %v588_v15, %v587_v14  ;;  %v589_v17 = vld [vmem:[#allocation7 + $0x50] sm:$0xff]  ;;  %v590_v18 = vld [vmem:[#allocation7 + $0x58] sm:$0xff]  ;;  %v591_v20 = vld [vmem:[#allocation7 + $0x60] sm:$0xff]  ;;  %vm681_vm1 = vcmp.lt.s32.totalorder %v2251_v42, 32  ;;  %s577_s27 = scalar_lea.vmem [#allocation13], %s2201_s8  ;;  %s2412_s23 = sld [smem:[#allocation30_spill]] }
  0xe1   : > { %1402 = vmatprep.subr.bf16.mxu0 %v1860_v0  ;;  %v1415_v19 = vpack.c.bf16 %v590_v18, %v589_v17  ;;  %v592_v21 = vld [vmem:[#allocation7 + $0x68] sm:$0xff]  ;;  %v593_v23 = vld [vmem:[#allocation7 + $0x70] sm:$0xff]  ;;  %v594_v24 = vld [vmem:[#allocation7 + $0x78] sm:$0xff]  ;;  %s1029_s6 = sshll.u32 %s577_s27, 4  ;;  %p2413_p2 = scmp.ne.s32.totalorder %s2396_s10, 0  ;;  %s2313_s6 = int_to_ptr.vmem [resolvable:$true] %s1029_s6 }
  0xe2   : > { %v1418_v22 = vpack.c.bf16 %v592_v21, %v591_v20  ;;  %v1421_v25 = vpack.c.bf16 %v594_v24, %v593_v23  ;;  %v578_v26 = vld [vmem:[%s512_s22] sm:$0xff]  ;;  %v1179_v27 = vld [vmem:[%s2358_s3] ss:$0 sm:$0xff]  ;;  %v705_v33 = vld [vmem:[#allocation8 + $0x8] sm:$0xff]  ;;  %s1768_s20 = scalar_lea.vmem %s2313_s6, 128  ;;  %s1863_s19 = smov [#allocation13]  }
  0xe3   : > { %v704_v32 = vld [vmem:[#allocation8] sm:$0xff]  ;;  %v706_v34 = vld [vmem:[#allocation8 + $0x10] sm:$0xff]  ;;  %v707_v36 = vld [vmem:[#allocation8 + $0x18] sm:$0xff]  ;;  %p1769_p0 = scmp.ne.s32.totalorder %s2313_s6, %s1768_s20  ;;  %s1772_s8 = sshll.u32 %s1863_s19, 4  ;;  %s1773_s8 = int_to_ptr.vmem [resolvable:$false] %s1772_s8 }
  0xe4   : > { %1404 = vmatpush3.bf16.msra.mxu0 %v1403_v7  ;;  %v1424_v35 = vpack.c.bf16 %v705_v33, %v704_v32  ;;  %v1427_v37 = vpack.c.bf16 %v707_v36, %v706_v34  ;;  %v708_v38 = vld [vmem:[#allocation8 + $0x20] sm:$0xff]  ;;  %v709_v39 = vld [vmem:[#allocation8 + $0x28] sm:$0xff]  ;;  %v710_v48 = vld [vmem:[#allocation8 + $0x30] sm:$0xff]  ;;  %p1775_p5 = scmp.lt.s32.totalorder %s2313_s6, %s1773_s8 }
  0xe5   : > { %1405 = vmatprep.subr.bf16.mxu0 %v1860_v0  ;;  %v1430_v40 = vpack.c.bf16 %v709_v39, %v708_v38  ;;  %v711_v49 = vld [vmem:[#allocation8 + $0x38] sm:$0xff]  ;;  %v712_v51 = vld [vmem:[#allocation8 + $0x40] sm:$0xff]  ;;  %v713_v52 = vld [vmem:[#allocation8 + $0x48] sm:$0xff]  ;;  %p1770_p4 = pnand %p1769_p0, %p2413_p2 }
  0xe6   : > { %1425 = vmatpush3.bf16.msra.mxu1 %v1424_v35  ;;  %v1433_v50 = vpack.c.bf16 %v711_v49, %v710_v48  ;;  %v1436_v53 = vpack.c.bf16 %v713_v52, %v712_v51  ;;  %v714_v54 = vld [vmem:[#allocation8 + $0x50] sm:$0xff]  ;;  %v715_v55 = vld [vmem:[#allocation8 + $0x58] sm:$0xff]  ;;  %v716_v57 = vld [vmem:[#allocation8 + $0x60] sm:$0xff] }
  0xe7   : > { %1426 = vmatprep.subr.bf16.mxu1 %v1860_v0  ;;  %v1439_v56 = vpack.c.bf16 %v715_v55, %v714_v54  ;;  %v717_v58 = vld [vmem:[#allocation8 + $0x68] sm:$0xff]  ;;  %v718_v60 = vld [vmem:[#allocation8 + $0x70] sm:$0xff]  ;;  %v719_v61 = vld [vmem:[#allocation8 + $0x78] sm:$0xff]  ;;  %p1771_p10 = pneg %p1770_p4 }
  0xe8   : > { %1407 = vmatpush3.bf16.msra.mxu0 %v1406_v10  ;;  %v1442_v59 = vpack.c.bf16 %v717_v58, %v716_v57  ;;  %v1445_v62 = vpack.c.bf16 %v719_v61, %v718_v60  ;;  %v799_v63 = vld [vmem:[#allocation10] sm:$0xff]  ;;  %v800_v2 = vld [vmem:[#allocation10 + $0x8] sm:$0xff]  ;;  %v801_v3 = vld [vmem:[#allocation10 + $0x10] sm:$0xff] }
  0xe9   : > { %1408 = vmatprep.subr.bf16.mxu0 %v1860_v0  ;;  %v1448_v4 = vpack.c.bf16 %v800_v2, %v799_v63  ;;  %v802_v5 = vld [vmem:[#allocation10 + $0x18] sm:$0xff]  ;;  %v803_v7 = vld [vmem:[#allocation10 + $0x20] sm:$0xff]  ;;  %v804_v8 = vld [vmem:[#allocation10 + $0x28] sm:$0xff] }
  0xea   : > { %1428 = vmatpush3.bf16.msra.mxu1 %v1427_v37  ;;  %v1451_v6 = vpack.c.bf16 %v802_v5, %v801_v3  ;;  %v1454_v9 = vpack.c.bf16 %v804_v8, %v803_v7  ;;  %v805_v10 = vld [vmem:[#allocation10 + $0x30] sm:$0xff]  ;;  %v806_v11 = vld [vmem:[#allocation10 + $0x38] sm:$0xff]  ;;  %v808_v14 = vld [vmem:[#allocation10 + $0x48] sm:$0xff] }
  0xeb   : > { %1429 = vmatprep.subr.bf16.mxu1 %v1860_v0  ;;  %v1457_v12 = vpack.c.bf16 %v806_v11, %v805_v10  ;;  %v810_v17 = vld [vmem:[#allocation10 + $0x58] sm:$0xff]  ;;  %v812_v20 = vld [vmem:[#allocation10 + $0x68] sm:$0xff]  ;;  %v1182_v34 = vld [vmem:[%s2407_s24] ss:$0 sm:$0xff] }
  0xec   : > { %1410 = vmatpush3.bf16.msra.mxu0 %v1409_v13  ;;  %v807_v13 = vld [vmem:[#allocation10 + $0x40] sm:$0xff]  ;;  %v814_v32 = vld [vmem:[#allocation10 + $0x78] sm:$0xff]  ;;  %v926_v52 = vld [vmem:[#allocation11 + $0x28] sm:$0xff] }
  0xed   : > { %1411 = vmatprep.subr.bf16.mxu0 %v1860_v0  ;;  %v1460_v15 = vpack.c.bf16 %v808_v14, %v807_v13  ;;  %v797_v36 = vld [vmem:[%s503_s2] sm:$0xff]  ;;  %v924_v49 = vld [vmem:[#allocation11 + $0x18] sm:$0xff]  ;;  %v931_v3 = vld [vmem:[#allocation11 + $0x50] sm:$0xff]  ;;  %s1016_s2 = scalar_lea.sflag [#allocation4], %s2198_s25 }
  0xee   : > { %1431 = vmatpush3.bf16.msra.mxu1 %v1430_v40  ;;  %v1183_v40 = vld [vmem:[%s2408_s7] ss:$0 sm:$0xff]  ;;  %v928_v60 = vld [vmem:[#allocation11 + $0x38] sm:$0xff]  ;;  %v930_v63 = vld [vmem:[#allocation11 + $0x48] sm:$0xff]  ;;  %s2311_s7 = scalar_lea.hbm %s2412_s23, %s1188_s11 }
  0xef   : > { %1432 = vmatprep.subr.bf16.mxu1 %v1860_v0  ;;  %v925_v51 = vld [vmem:[#allocation11 + $0x20] sm:$0xff]  ;;  %v934_v42 = vld [vmem:[#allocation11 + $0x68] sm:$0xff]  ;;  %v935_v8 = vld [vmem:[#allocation11 + $0x70] sm:$0xff] }
  0xf0   : > { %1413 = vmatpush3.bf16.msra.mxu0 %v1412_v16  ;;  %v809_v16 = vld [vmem:[#allocation10 + $0x50] sm:$0xff]  ;;  %v1184_v14 = vld [vmem:[%s2409_s9] ss:$0 sm:$0xff]  ;;  %s1774_s9 = scalar_lea.vmem %s1773_s8, 256 }
  0xf1   : > { %1414 = vmatprep.subr.bf16.mxu0 %v1860_v0  ;;  %v1463_v18 = vpack.c.bf16 %v810_v17, %v809_v16  ;;  %v1185_v17 = vld [vmem:[%s2410_s12] ss:$0 sm:$0xff]  ;;  %p1776_p7 = scmp.lt.s32.totalorder %s1774_s9, %s1768_s20 }
  0xf2   : > { %1434 = vmatpush3.bf16.msra.mxu1 %v1433_v50 }
  0xf3   : > { %1435 = vmatprep.subr.bf16.mxu1 %v1860_v0  ;;  %p1777_p8 = por %p1776_p7, %p1775_p5 }
  0xf4   : > { %1416 = vmatpush3.bf16.msra.mxu0 %v1415_v19  ;;  %v811_v19 = vld [vmem:[#allocation10 + $0x60] sm:$0xff] }
  0xf5   : > { %1417 = vmatprep.subr.bf16.mxu0 %v1860_v0  ;;  %v1466_v21 = vpack.c.bf16 %v812_v20, %v811_v19  ;;  %p1778_p6 = pnand %p1777_p8, %p1771_p10 }
  0xf6   : > { %1437 = vmatpush3.bf16.msra.mxu1 %v1436_v53  ;;  %v1478_v53 = vpack.c.bf16 %v926_v52, %v925_v51 }
  0xf7   : > { %1438 = vmatprep.subr.bf16.mxu1 %v1860_v0 }
  0xf8   : > { %1419 = vmatpush3.bf16.msra.mxu0 %v1418_v22 }
  0xf9   : > { %1420 = vmatprep.subr.bf16.mxu0 %v1860_v0 }
  0xfa   : > { %1440 = vmatpush3.bf16.msra.mxu1 %v1439_v56 }
  0xfb   : > { %1441 = vmatprep.subr.bf16.mxu1 %v1860_v0 }
  0xfc   : > { %1422 = vmatpush3.bf16.msra.mxu0 %v1421_v25  ;;  %v1180_v25 = vld [vmem:[%s2359_s4] ss:$0 sm:$0xff] }
  0xfd   : > { %1447 = vmatprep.subr.bf16.mxu0 %v1860_v0 }
  0xfe   : > { %1443 = vmatpush3.bf16.msra.mxu1 %v1442_v59  ;;  %v927_v59 = vld [vmem:[#allocation11 + $0x30] sm:$0xff] }
  0xff   : > { %1292 = vmatmul.mubr.f32.vlgmr.msra.gmra.mrb[0].mxu0 %v578_v26  ;;  %1444 = vmatprep.subr.bf16.mxu1 %v1860_v0  ;;  %v1481_v61 = vpack.c.bf16 %v928_v60, %v927_v59 }
 0x100   : > { %1361 = vmatprep.mubr.msk.f32.mxu0 %vm1861_vm0, %v1862_v1  ;;  %1449 = vmatpush3.bf16.msra.mxu0 %v1448_v4  ;;  %v932_v4 = vld [vmem:[#allocation11 + $0x58] sm:$0xff] }
 0x101   : > { %1450 = vmatprep.subr.bf16.mxu0 %v1860_v0  ;;  %v1487_v5 = vpack.c.bf16 %v932_v4, %v931_v3 }
 0x102   : > { %1446 = vmatpush3.bf16.msra.mxu1 %v1445_v62  ;;  %v929_v62 = vld [vmem:[#allocation11 + $0x40] sm:$0xff] }
 0x103   : > { %1471 = vmatprep.subr.bf16.mxu1 %v1860_v0  ;;  %v1484_v2 = vpack.c.bf16 %v930_v63, %v929_v62 }
 0x104   : > { %1452 = vmatpush3.bf16.msra.mxu0 %v1451_v6  ;;  %v933_v6 = vld [vmem:[#allocation11 + $0x60] sm:$0xff] }
 0x105   : > { %1453 = vmatprep.subr.bf16.mxu0 %v1860_v0  ;;  %v1490_v7 = vpack.c.bf16 %v934_v42, %v933_v6 }
 0x108   : > { %1455 = vmatpush3.bf16.msra.mxu0 %v1454_v9  ;;  %v936_v9 = vld [vmem:[#allocation11 + $0x78] sm:$0xff] }
 0x109   : > { %1456 = vmatprep.subr.bf16.mxu0 %v1860_v0  ;;  %v1493_v10 = vpack.c.bf16 %v936_v9, %v935_v8 }
 0x10c   : > { %1458 = vmatpush3.bf16.msra.mxu0 %v1457_v12 }
 0x10d   : > { %1459 = vmatprep.subr.bf16.mxu0 %v1860_v0 }
 0x110   : > { %1461 = vmatpush3.bf16.msra.mxu0 %v1460_v15 }
 0x111   : > { %1462 = vmatprep.subr.bf16.mxu0 %v1860_v0 }
 0x114   : > { %1464 = vmatpush3.bf16.msra.mxu0 %v1463_v18 }
 0x115   : > { %1465 = vmatprep.subr.bf16.mxu0 %v1860_v0 }
 0x118   : > { %1467 = vmatpush3.bf16.msra.mxu0 %v1466_v21 }
 0x119   : > { %1468 = vmatprep.subr.bf16.mxu0 %v1860_v0 }
 0x1d2   : > { %v668_v28 = vpop.f32.mrb[0].mxu0 }
 0x1d3   : > { %v669_v29 = vadd.f32 %v1179_v27, %v668_v28  ;;  %v1293_v30 = vpop.f32.mrb[1].mxu0  ;;  %v1181_v28 = vld [vmem:[%s2360_s5] ss:$0 sm:$0xff] }
 0x1d5   : > { %v672_v31 = vmax.f32 %v669_v29, 0.0 }
 0x1d7   : > { %675 = vadd.xlane.f32.xlu0 %v672_v31 }
 0x264   : > { %v676_v43 = vpop.xlane.xlu0 %675 }
 0x265   : > { %v677_v44 = vmul.f32 0.03125, %v676_v43 }
 0x267   : > { %v2254_v45 = vsub.f32 %v672_v31, %v677_v44  ;;  %v813_v31 = vld [vmem:[#allocation10 + $0x70] sm:$0xff] }
 0x268   : > { %v1469_v33 = vpack.c.bf16 %v814_v32, %v813_v31 }
 0x269   : > { %v682_v46 = vsel %vm681_vm1, %v2254_v45, 0.0 }
 0x26a   : > { %v683_v47 = vmul.f32 %v682_v46, %v682_v46  ;;  %1470 = vmatpush3.bf16.msra.mxu0 %v1469_v33  ;;  %v922_v46 = vld [vmem:[#allocation11 + $0x8] sm:$0xff] }
 0x26c   : > { %684 = vadd.xlane.f32.xlu0 %v683_v47  ;;  %v923_v47 = vld [vmem:[#allocation11 + $0x10] sm:$0xff] }
 0x26d   : > { %v1475_v50 = vpack.c.bf16 %v924_v49, %v923_v47 }
 0x2f9   : > { %v685_v22 = vpop.xlane.xlu0 %684 }
 0x2fa   : > { %v686_v23 = vmul.f32 0.03125, %v685_v22 }
 0x2fc   : > { %v687_v24 = vadd.f32 1e-12, %v686_v23 }
 0x2fe   : > { %1592 = vrsqrt.f32 %v687_v24 }
 0x308   : > { %v1593_v26 = vpop.eup %1592 }
 0x309   : > { %v695_v27 = vmul.f32 %v1593_v26, %v1180_v25 }
 0x30b   : > { %v696_v29 = vmul.f32 %v695_v27, %v2254_v45  ;;  %v921_v45 = vld [vmem:[#allocation11] sm:$0xff] }
 0x30c   : > { %v1472_v48 = vpack.c.bf16 %v922_v46, %v921_v45 }
 0x30d   : > { %v703_v30 = vadd.f32 %v1181_v28, %v696_v29 }
 0x30f   : > { %1327 = vmatmul.mubr.f32.vlgmr.msra.gmra.mrb[0].mxu1 %v703_v30 }
 0x310   : > { %1396 = vmatprep.mubr.msk.f32.mxu1 %vm1861_vm0, %v1862_v1  ;;  %1473 = vmatpush3.bf16.msra.mxu1 %v1472_v48 }
 0x311   : > { %1474 = vmatprep.subr.bf16.mxu1 %v1860_v0 }
 0x314   : > { %1476 = vmatpush3.bf16.msra.mxu1 %v1475_v50 }
 0x315   : > { %1477 = vmatprep.subr.bf16.mxu1 %v1860_v0 }
 0x318   : > { %1479 = vmatpush3.bf16.msra.mxu1 %v1478_v53 }
 0x319   : > { %1480 = vmatprep.subr.bf16.mxu1 %v1860_v0 }
 0x31c   : > { %1482 = vmatpush3.bf16.msra.mxu1 %v1481_v61 }
 0x31d   : > { %1483 = vmatprep.subr.bf16.mxu1 %v1860_v0 }
 0x320   : > { %1485 = vmatpush3.bf16.msra.mxu1 %v1484_v2 }
 0x321   : > { %1486 = vmatprep.subr.bf16.mxu1 %v1860_v0 }
 0x324   : > { %1488 = vmatpush3.bf16.msra.mxu1 %v1487_v5 }
 0x325   : > { %1489 = vmatprep.subr.bf16.mxu1 %v1860_v0 }
 0x328   : > { %1491 = vmatpush3.bf16.msra.mxu1 %v1490_v7 }
 0x329   : > { %1492 = vmatprep.subr.bf16.mxu1 %v1860_v0  ;;  %v1186_v0 = vld [vmem:[%s2411_s14] ss:$0 sm:$0xff] }
 0x32c   : > { %1494 = vmatpush3.bf16.msra.mxu1 %v1493_v10 }
 0x3e2   : > { %v793_v35 = vpop.f32.mrb[0].mxu1 }
 0x3e3   : > { %v794_v37 = vadd.f32 %v1182_v34, %v793_v35  ;;  %v1328_v38 = vpop.f32.mrb[1].mxu1 }
 0x3e5   : > { %v798_v39 = vadd.f32 %v797_v36, %v794_v37 }
 0x3e7   : > { %1362 = vmatmul.mubr.f32.vlgmr.msra.gmra.mrb[2].mxu0 %v798_v39 }
 0x4ba   : > { %v888_v1 = vpop.f32.mrb[2].mxu0 }
 0x4bb   : > { %v889_v41 = vadd.f32 %v1183_v40, %v888_v1  ;;  %v1363_v43 = vpop.f32.mrb[3].mxu0 }
 0x4bd   : > { %v892_v44 = vmax.f32 %v889_v41, 0.0 }
 0x4bf   : > { %895 = vadd.xlane.f32.xlu1 %v892_v44 }
 0x54c   : > { %v896_v54 = vpop.xlane.xlu1 %895 }
 0x54d   : > { %v897_v55 = vmul.f32 0.03125, %v896_v54 }
 0x54f   : > { %v898_v56 = vsub.f32 %v892_v44, %v897_v55 }
 0x551   : > { %v899_v57 = vsel %vm681_vm1, %v898_v56, 0.0 }
 0x552   : > { %v900_v58 = vmul.f32 %v899_v57, %v899_v57 }
 0x554   : > { %901 = vadd.xlane.f32.xlu1 %v900_v58 }
 0x5e1   : > { %v902_v11 = vpop.xlane.xlu1 %901 }
 0x5e2   : > { %v903_v12 = vmul.f32 0.03125, %v902_v11 }
 0x5e4   : > { %v904_v13 = vadd.f32 1e-12, %v903_v12 }
 0x5e6   : > { %1594 = vrsqrt.f32 %v904_v13 }
 0x5f0   : > { %v1595_v15 = vpop.eup %1594 }
 0x5f1   : > { %v912_v16 = vmul.f32 %v1595_v15, %v1184_v14 }
 0x5f3   : > { %v913_v18 = vmul.f32 %v912_v16, %v898_v56 }
 0x5f5   : > { %v920_v19 = vadd.f32 %v1185_v17, %v913_v18 }
 0x5f7   : > { %1397 = vmatmul.mubr.f32.vlgmr.msra.gmra.mrb[2].mxu1 %v920_v19 }
 0x6ca   : > { %v1010_v20 = vpop.f32.mrb[2].mxu1 }
 0x6cb   : > { %v1011_v21 = vadd.f32 %v1186_v0, %v1010_v20  ;;  %v1398_v22 = vpop.f32.mrb[3].mxu1 }
 0x6cd   : > { %1014 = vst [vmem:[%s577_s27] sm:$0xff] %v1011_v21 }
 0x6ce   : > { %1781 = shalt.err (!%p1778_p6)
}
 0x6cf   : > { %s1782_s25 = scalar_lea.hbm %s2311_s7, 128  ;;  %s1786_s12 = scalar_lea.hbm %s2412_s23, 256 }
 0x6d0   : > { %p1783_p11 = scmp.ne.s32.totalorder %s2311_s7, %s1782_s25  ;;  %p1787_p12 = scmp.lt.u32.totalorder %s2311_s7, %s2412_s23 }
 0x6d1   : > { %p1788_p3 = scmp.lt.u32.totalorder %s1786_s12, %s1782_s25  ;;  %p1790_p0 = scmp.lt.u32.totalorder %s1782_s25, %s2311_s7 }
 0x6d2   : > { %p1784_p1 = pnand %p1783_p11, %p2413_p2 }
 0x6d3   : > { %p1789_p13 = por %p1788_p3, %p1787_p12 }
 0x6d4   : > { %p1785_p9 = pneg %p1784_p1 }
 0x6d5   : > { %p1791_p4 = por %p1790_p0, %p1789_p13 }
 0x6d7   : > { %p1792_p10 = pnand %p1791_p4, %p1785_p9 }
 0x6d9   : > { %1795 = shalt.err (!%p1792_p10)
}
 0x6da   : > { %1515 = dma.vmem_to_hbm [thread:$0]  (%p2413_p2), %s2313_s6, 128, %s2311_s7, %s1016_s2  }
 0x6db PF: > { %s1041_s14 = sand.u32 1, %s1838_s29   ;;  %p2414_p5 = scmp.ne.s32.totalorder %s2397_s17, 0 }
 0x6dc   : > { %p2415_p7 = scmp.ge.s32.totalorder %s1850_s16, 2  ;;  %s1042_s11 = scalar_lea.sflag [#allocation4], %s1041_s14 }
 0x6de   : > { %p1538_p8 = pnand %p2415_p7, %p2414_p5 }
 0x6e0   : > { %1833 = dma.done.wait (!%p1538_p8), %s1042_s11, 128  }
 0x6e1   : > { %1835 = vsyncadd (!%p1538_p8), %s1042_s11, 4294967168  ;;  %s2416_s27 = sld [smem:[#allocation20_spill]]  ;;  %p32_p6 = scmp.ge.s32.totalorder %s2091_s21, 4  }
 0x6e2   : > { %s2417_s29 = smov %s1842_s30  ;;  %s2418_s30 = smov %s1846_s15 }
 0x6e3   : > { %s2420_s16 = smov %s2091_s21  ;;  %34 = sbr.rel (!%p32_p6) target bundleno = 20 (0x14), region = 150 }
 0x6e7   : > { %s2419_s15 = smov %s2416_s27 }
 0x6ea   :  { %1047 = vsyncpa [#allocation3], 1 }
 0x6eb   :  { %1049 = vsyncpa [#allocation3 + $0x1], 1 }
 0x6ec   :  { %1050 = vsyncpa [#allocation6], 1 }
 0x6ed   :  { %1052 = vsyncpa [#allocation6 + $0x1], 1 }
 0x6ee   :  { %1053 = vsyncpa [#allocation9], 1 }
 0x6ef   :  { %1054 = vsyncpa [#allocation12], 1 }
 0x6f0   :  { %1055 = vsyncpa [#allocation4], 1 }
 0x6f1   :  { %1057 = vsyncpa [#allocation4 + $0x1], 1 }

</bundles_post_ra>
